<compile_context>
chip_gen: v7x
topology: tpu7x:2x2x1
jax: 0.10.0
libtpu: 0.0.40
codegen_flags: <defaults>
</compile_context>

<pallas_src>
import math

import jax
import jax.numpy as jnp
from jax import lax
from jax.experimental import pallas as pl
from jax.experimental.pallas import tpu as pltpu

NEG = -1e30          # additive mask value (exp underflows to 0, matching -inf)
BF16 = jnp.bfloat16
LANE = 128


def _round_up(n, m):
    return (n + m - 1) // m * m


def _num_grid_steps(batch):
    """1 grid step (batch folded) on single-TC chips; 2-way grid on v7x."""
    try:
        kind = jax.devices()[0].device_kind.lower()
    except Exception:
        kind = ""
    cores = 2 if ("v7" in kind or "7x" in kind) else 1
    return max(math.gcd(batch, cores), 1)


# ----------------------------- in-kernel math ------------------------------

def _linear(x, w, b):
    # y = x @ W + b with W pre-transposed to (in, out) bf16, b f32 (1, out).
    return jnp.dot(x.astype(BF16), w, preferred_element_type=jnp.float32) + b


def _layer_norm(x, w, b, eps=1e-5):
    mu = jnp.mean(x, axis=-1, keepdims=True)
    var = jnp.mean(jnp.square(x - mu), axis=-1, keepdims=True)
    return (x - mu) * lax.rsqrt(var + eps) * w + b


def _softmax(x):
    m = jnp.max(x, axis=-1, keepdims=True)
    e = jnp.exp(x - m)
    return e / jnp.sum(e, axis=-1, keepdims=True)     # exact divide (parity)


def _attention(q, k, v, bias, w_out, b_out):
    # q already carries the folded 1/sqrt(E) scale; q/k/v are bf16.
    s = lax.dot_general(q, k, (((1,), (1,)), ((), ())),
                        preferred_element_type=jnp.float32)
    if bias is not None:
        s = s + bias
    p = _softmax(s)
    o = jnp.dot(p.astype(BF16), v, preferred_element_type=jnp.float32)
    return _linear(o, w_out, b_out)


def _self_attn(x, w_in, b_in, w_out, b_out, bias, emb):
    qkv = _linear(x, w_in, b_in).astype(BF16)          # single (M,E)x(E,3E) matmul
    return _attention(qkv[:, :emb], qkv[:, emb:2 * emb], qkv[:, 2 * emb:],
                      bias, w_out, b_out)


def _ffn(x, w1, b1, w2, b2):
    h = jnp.maximum(_linear(x, w1, b1), 0.0)
    return _linear(h, w2, b2)


# ------------------------------ kernel factory ------------------------------

def _make_kernel(dims, woff, foff):
    E = dims["emb"]
    Vs_pad, Vt_emb_pad = dims["vs_pad"], dims["vt_emb_pad"]
    Ms, Mt, Bp = dims["ms"], dims["mt"], dims["bp"]

    def kernel(src_ref, trg_ref, encb_ref, wslab_ref, fslab_ref, out_ref):
        def W(name):                          # bf16 weight slice (in, out)
            r0, r, c = woff[name]
            return wslab_ref[r0:r0 + r, :c]

        def F(name):                          # f32 bias / LN / pos / mask slice
            r0, r, c = foff[name]
            return fslab_ref[r0:r0 + r, :c]

        # ---- embeddings: one-hot gather on the MXU + learned positions ----
        sid = src_ref[0]                                            # (Ms, 1) int32
        tid = trg_ref[0]                                            # (Mt, 1) int32
        s_oh = (lax.broadcasted_iota(jnp.int32, (Ms, Vs_pad), 1) == sid).astype(BF16)
        t_oh = (lax.broadcasted_iota(jnp.int32, (Mt, Vt_emb_pad), 1) == tid).astype(BF16)
        x = jnp.dot(s_oh, W("enc_word_emb"),
                    preferred_element_type=jnp.float32) + F("enc_pos")
        y = jnp.dot(t_oh, W("dec_word_emb"),
                    preferred_element_type=jnp.float32) + F("dec_pos")
        # self.dropout(...) -> identity in eval mode.

        # ---- precomputed additive biases ----
        enc_bias = encb_ref[0]                       # (Ms, Ms): padding + batch block
        dec_bias = F("dec_bias")                     # (Mt, Mt): causal + batch block
        cross_bias = F("cross_bias") if Bp > 1 else None   # (Mt, Ms): batch block only

        # ---- encoder layer (post-norm, ReLU FFN) ----
        a = _self_attn(x, W("e_attn_in_w"), F("e_attn_in_b"),
                       W("e_attn_out_w"), F("e_attn_out_b"), enc_bias, E)
        x = _layer_norm(x + a, F("e_ln1_w"), F("e_ln1_b"))
        x = _layer_norm(x + _ffn(x, W("e_lin1_w"), F("e_lin1_b"),
                                 W("e_lin2_w"), F("e_lin2_b")),
                        F("e_ln2_w"), F("e_ln2_b"))
        mem = _layer_norm(x, F("enc_norm_w"), F("enc_norm_b"))      # encoder norm

        # ---- decoder layer (post-norm) ----
        a = _self_attn(y, W("d_sattn_in_w"), F("d_sattn_in_b"),
                       W("d_sattn_out_w"), F("d_sattn_out_b"), dec_bias, E)
        y = _layer_norm(y + a, F("d_ln1_w"), F("d_ln1_b"))
        # memory_key_padding_mask is None in the reference forward -> only the
        # cross-batch block mask is needed (and only when Bp > 1).
        q = _linear(y, W("d_xattn_q_w"), F("d_xattn_q_b")).astype(BF16)
        kv = _linear(mem, W("d_xattn_kv_w"), F("d_xattn_kv_b")).astype(BF16)
        a = _attention(q, kv[:, :E], kv[:, E:], cross_bias,
                       W("d_xattn_out_w"), F("d_xattn_out_b"))
        y = _layer_norm(y + a, F("d_ln2_w"), F("d_ln2_b"))
        y = _layer_norm(y + _ffn(y, W("d_lin1_w"), F("d_lin1_b"),
                                 W("d_lin2_w"), F("d_lin2_b")),
                        F("d_ln3_w"), F("d_ln3_b"))
        y = _layer_norm(y, F("dec_norm_w"), F("dec_norm_b"))        # decoder norm

        # ---- fc_out (lane-dense: vocab padded to 128) ----
        out_ref[0] = _linear(y, W("fc_w"), F("fc_b"))               # (Mt, Vt_pad)

    return kernel


# ------------------------------ parameter init ------------------------------

def init_params(key, cfg):
    """Raw f32 parameters in PyTorch-equivalent layout."""
    E, Fd = cfg["emb"], cfg["ff"]
    Vs, Vt = cfg["inp_vocab"], cfg["trg_vocab"]
    Ss, St = cfg["src_len"], cfg["trg_len"]
    defs = {
        "enc_word_emb": (Vs, E), "enc_pos_emb": (Ss, E),
        "dec_word_emb": (Vt, E), "dec_pos_emb": (St, E),
        "e_attn_in_w": (3 * E, E), "e_attn_in_b": (3 * E,),
        "e_attn_out_w": (E, E), "e_attn_out_b": (E,),
        "e_lin1_w": (Fd, E), "e_lin1_b": (Fd,),
        "e_lin2_w": (E, Fd), "e_lin2_b": (E,),
        "e_ln1_w": (E,), "e_ln1_b": (E,),
        "e_ln2_w": (E,), "e_ln2_b": (E,),
        "enc_norm_w": (E,), "enc_norm_b": (E,),
        "d_sattn_in_w": (3 * E, E), "d_sattn_in_b": (3 * E,),
        "d_sattn_out_w": (E, E), "d_sattn_out_b": (E,),
        "d_xattn_in_w": (3 * E, E), "d_xattn_in_b": (3 * E,),
        "d_xattn_out_w": (E, E), "d_xattn_out_b": (E,),
        "d_lin1_w": (Fd, E), "d_lin1_b": (Fd,),
        "d_lin2_w": (E, Fd), "d_lin2_b": (E,),
        "d_ln1_w": (E,), "d_ln1_b": (E,),
        "d_ln2_w": (E,), "d_ln2_b": (E,),
        "d_ln3_w": (E,), "d_ln3_b": (E,),
        "dec_norm_w": (E,), "dec_norm_b": (E,),
        "fc_w": (Vt, E), "fc_b": (Vt,),
    }
    raw = {}
    for i, (name, shape) in enumerate(defs.items()):
        if ("_ln" in name) or ("norm" in name):
            raw[name] = (jnp.ones(shape, jnp.float32) if name.endswith("_w")
                         else jnp.zeros(shape, jnp.float32))
        else:
            k = jax.random.fold_in(key, i)
            raw[name] = (0.05 * jax.random.normal(k, shape)).astype(jnp.float32)
    return raw


def _pack_slab(items, width, dtype, align=8):
    """Pack a list of (name, 2-D array) into one (rows, width) slab with
    8-aligned static row offsets.  Returns (slab, {name: (row0, rows, cols)})."""
    offs, rows = {}, 0
    for name, a in items:
        rows = _round_up(rows, align)
        offs[name] = (rows, a.shape[0], a.shape[1])
        rows += a.shape[0]
    rows = _round_up(rows, align)
    slab = jnp.zeros((rows, width), dtype)
    for name, a in items:
        r0, r, c = offs[name]
        slab = slab.at[r0:r0 + r, :c].set(a.astype(dtype))
    return slab, offs


def prepare_params(raw, cfg, bp):
    """Kernel-layout params packed into two slabs.

    Weight slab (bf16, width 128): every matmul operand pre-transposed to
    (in, out) at a static 8-aligned row offset; word embeddings row-padded.
    Float slab (f32, width 128): biases, LayerNorm params, batch-tiled
    positional embeddings, and the static causal / cross-batch bias matrices.
    The 1/sqrt(E) attention scale is folded into the Q projections (free)."""
    E, Fd = cfg["emb"], cfg["ff"]
    Vs, Vt = cfg["inp_vocab"], cfg["trg_vocab"]
    Ss, St = cfg["src_len"], cfg["trg_len"]
    Vs_pad, Vt_emb_pad = _round_up(Vs, 8), _round_up(Vt, 8)
    Vt_pad = _round_up(Vt, LANE)
    Ms, Mt = bp * Ss, bp * St
    scale = 1.0 / math.sqrt(E)

    def padded(a, rows, cols):
        return jnp.zeros((rows, cols), a.dtype).at[:a.shape[0], :a.shape[1]].set(a)

    def scale_q(w, b):            # fold 1/sqrt(E) into the Q rows (done once)
        return w.at[:E].multiply(scale), b.at[:E].multiply(scale)

    e_in_w, e_in_b = scale_q(raw["e_attn_in_w"], raw["e_attn_in_b"])
    ds_in_w, ds_in_b = scale_q(raw["d_sattn_in_w"], raw["d_sattn_in_b"])
    dx_in_w, dx_in_b = scale_q(raw["d_xattn_in_w"], raw["d_xattn_in_b"])

    w_items = [
        ("enc_word_emb", padded(raw["enc_word_emb"], Vs_pad, E)),
        ("dec_word_emb", padded(raw["dec_word_emb"], Vt_emb_pad, E)),
        ("e_attn_in_w", e_in_w.T), ("e_attn_out_w", raw["e_attn_out_w"].T),
        ("e_lin1_w", raw["e_lin1_w"].T), ("e_lin2_w", raw["e_lin2_w"].T),
        ("d_sattn_in_w", ds_in_w.T), ("d_sattn_out_w", raw["d_sattn_out_w"].T),
        ("d_xattn_q_w", dx_in_w[:E].T), ("d_xattn_kv_w", dx_in_w[E:].T),
        ("d_xattn_out_w", raw["d_xattn_out_w"].T),
        ("d_lin1_w", raw["d_lin1_w"].T), ("d_lin2_w", raw["d_lin2_w"].T),
        ("fc_w", padded(raw["fc_w"].T, E, Vt_pad)),
    ]
    wslab, woff = _pack_slab(w_items, LANE, BF16)

    # Static additive biases (hoisted out of the kernel).
    bt = jnp.arange(Mt) // St
    pt = jnp.arange(Mt) % St
    bs = jnp.arange(Ms) // Ss
    dec_bias = jnp.where((bt[:, None] != bt[None, :]) | (pt[None, :] > pt[:, None]),
                         NEG, 0.0).astype(jnp.float32)
    cross_bias = jnp.where(bt[:, None] != bs[None, :], NEG, 0.0).astype(jnp.float32)

    def row(name):
        return raw[name].reshape(1, -1)

    f_items = [
        ("enc_pos", jnp.tile(raw["enc_pos_emb"], (bp, 1))),
        ("dec_pos", jnp.tile(raw["dec_pos_emb"], (bp, 1))),
        ("dec_bias", dec_bias), ("cross_bias", cross_bias),
        ("e_attn_in_b", e_in_b.reshape(1, -1)), ("e_attn_out_b", row("e_attn_out_b")),
        ("e_lin1_b", row("e_lin1_b")), ("e_lin2_b", row("e_lin2_b")),
        ("e_ln1_w", row("e_ln1_w")), ("e_ln1_b", row("e_ln1_b")),
        ("e_ln2_w", row("e_ln2_w")), ("e_ln2_b", row("e_ln2_b")),
        ("enc_norm_w", row("enc_norm_w")), ("enc_norm_b", row("enc_norm_b")),
        ("d_sattn_in_b", ds_in_b.reshape(1, -1)), ("d_sattn_out_b", row("d_sattn_out_b")),
        ("d_xattn_q_b", dx_in_b[:E].reshape(1, -1)),
        ("d_xattn_kv_b", dx_in_b[E:].reshape(1, -1)),
        ("d_xattn_out_b", row("d_xattn_out_b")),
        ("d_lin1_b", row("d_lin1_b")), ("d_lin2_b", row("d_lin2_b")),
        ("d_ln1_w", row("d_ln1_w")), ("d_ln1_b", row("d_ln1_b")),
        ("d_ln2_w", row("d_ln2_w")), ("d_ln2_b", row("d_ln2_b")),
        ("d_ln3_w", row("d_ln3_w")), ("d_ln3_b", row("d_ln3_b")),
        ("dec_norm_w", row("dec_norm_w")), ("dec_norm_b", row("dec_norm_b")),
        ("fc_b", padded(raw["fc_b"].reshape(1, -1), 1, Vt_pad)),
    ]
    fslab, foff = _pack_slab(f_items, LANE, jnp.float32)
    return wslab, woff, fslab, foff


# --------------------------------- wrapper ----------------------------------

def transformer_forward(src, trg, wslab, woff, fslab, foff, cfg, grid_steps):
    B, Ss = src.shape
    _, St = trg.shape
    Vs, Vt = cfg["inp_vocab"], cfg["trg_vocab"]
    Vt_pad = _round_up(Vt, LANE)
    G = grid_steps
    assert B % G == 0
    Bp = B // G
    Ms, Mt = Bp * Ss, Bp * St

    # Fold Bp batch elements per grid step: ids as (G, Bp*S, 1) int32 columns.
    src_g = src.astype(jnp.int32).reshape(G, Ms, 1)
    trg_g = trg.astype(jnp.int32).reshape(G, Mt, 1)

    # Encoder bias: src key-padding mask + cross-batch block mask (hoisted).
    bs = jnp.arange(Ms) // Ss
    pad = src_g.reshape(G, 1, Ms) == cfg["src_pad_idx"]
    enc_bias = jnp.where((bs[:, None] != bs[None, :])[None] | pad,
                         NEG, 0.0).astype(jnp.float32)

    dims = dict(emb=cfg["emb"], vs_pad=_round_up(Vs, 8), vt_emb_pad=_round_up(Vt, 8),
                ms=Ms, mt=Mt, bp=Bp)
    kernel = _make_kernel(dims, woff, foff)

    in_specs = [
        pl.BlockSpec((1, Ms, 1), lambda g: (g, 0, 0)),          # src ids
        pl.BlockSpec((1, Mt, 1), lambda g: (g, 0, 0)),          # trg ids
        pl.BlockSpec((1, Ms, Ms), lambda g: (g, 0, 0)),         # encoder bias
        pl.BlockSpec(memory_space=pltpu.MemorySpace.VMEM),      # bf16 weight slab
        pl.BlockSpec(memory_space=pltpu.MemorySpace.VMEM),      # f32 bias/LN/pos slab
    ]

    out = pl.pallas_call(
        kernel,
        out_shape=jax.ShapeDtypeStruct((G, Mt, Vt_pad), jnp.float32),
        grid_spec=pltpu.PrefetchScalarGridSpec(
            num_scalar_prefetch=0,
            grid=(G,),
            in_specs=in_specs,
            out_specs=pl.BlockSpec((1, Mt, Vt_pad), lambda g: (g, 0, 0)),
        ),
        compiler_params=pltpu.CompilerParams(
            dimension_semantics=("parallel",),
            vmem_limit_bytes=16 * 1024 * 1024,   # actual footprint is < 1 MiB
        ),
    )(src_g, trg_g, enc_bias, wslab, fslab)

    return out.reshape(B, St, Vt_pad)[:, :, :Vt]   # drop the lane padding


# ----------------------------------- main ------------------------------------

if __name__ == "__main__":
    cfg = dict(
        inp_vocab=50, trg_vocab=48,
        src_pad_idx=0, trg_pad_idx=0,     # trg_pad_idx unused by the reference forward
        emb=32, ff=64,                    # emb_size=32, forward_expansion=64
        src_len=10, trg_len=8,
    )
    B = 2

    # v5e/v6e (1 TC): fold the whole batch into one grid step.
    # v7x (2 TCs): keep a 2-way "parallel" grid so both cores are fed.
    G = _num_grid_steps(B)
    Bp = B // G

    key = jax.random.PRNGKey(0)
    k_par, k_src, k_trg = jax.random.split(key, 3)
    raw_params = init_params(k_par, cfg)
    wslab, woff, fslab, foff = prepare_params(raw_params, cfg, Bp)

    src = jax.random.randint(k_src, (B, cfg["src_len"]), 1, cfg["inp_vocab"],
                             dtype=jnp.int32)
    src = src.at[:, -2:].set(cfg["src_pad_idx"])   # exercise the padding mask
    trg = jax.random.randint(k_trg, (B, cfg["trg_len"]), 1, cfg["trg_vocab"],
                             dtype=jnp.int32)

    out = transformer_forward(src, trg, wslab, woff, fslab, foff, cfg, grid_steps=G)
    out = jax.block_until_ready(out)
    assert out.shape == (B, cfg["trg_len"], cfg["trg_vocab"])
    assert bool(jnp.all(jnp.isfinite(out)))
    print("KERNEL_OK")
</pallas_src>

<mosaic_0001>
module attributes {stable_mosaic.version = 11 : i64} {
  func.func @kernel(%arg0: i32, %arg1: memref<1x20x1xi32, #tpu.memory_space<vmem>>, %arg2: memref<1x16x1xi32, #tpu.memory_space<vmem>>, %arg3: memref<1x20x20xf32, #tpu.memory_space<vmem>>, %arg4: memref<552x128xbf16, #tpu.memory_space<vmem>>, %arg5: memref<280x128xf32, #tpu.memory_space<vmem>>, %arg6: memref<1x16x128xf32, #tpu.memory_space<vmem>>) attributes {dimension_semantics = [#tpu.dimension_semantics<parallel>], iteration_bounds = array<i64: 1>, scalar_prefetch = 0 : i64, scratch_operands = 0 : i64, tpu.core_type = #tpu.core_type<tc>, window_params = [{transform_indices = @transform_0, window_bounds = array<i64: 1, 20, 1>}, {transform_indices = @transform_1, window_bounds = array<i64: 1, 16, 1>}, {transform_indices = @transform_2, window_bounds = array<i64: 1, 20, 20>}, {pipeline_mode = #tpu.pipeline_mode<synchronous>, transform_indices = @transform_3, window_bounds = array<i64: 552, 128>}, {pipeline_mode = #tpu.pipeline_mode<synchronous>, transform_indices = @transform_4, window_bounds = array<i64: 280, 128>}, {transform_indices = @transform_5, window_bounds = array<i64: 1, 16, 128>}]} {
    %c0 = arith.constant 0 : index
    %c0_0 = arith.constant 0 : index
    %c0_1 = arith.constant 0 : index
    %0 = vector.load %arg1[%c0, %c0_0, %c0_1] : memref<1x20x1xi32, #tpu.memory_space<vmem>>, vector<1x20x1xi32>
    %1 = vector.shape_cast %0 : vector<1x20x1xi32> to vector<20x1xi32>
    %c0_2 = arith.constant 0 : index
    %c0_3 = arith.constant 0 : index
    %c0_4 = arith.constant 0 : index
    %2 = vector.load %arg2[%c0_2, %c0_3, %c0_4] : memref<1x16x1xi32, #tpu.memory_space<vmem>>, vector<1x16x1xi32>
    %3 = vector.shape_cast %2 : vector<1x16x1xi32> to vector<16x1xi32>
    %4 = tpu.iota {dimensions = array<i32: 1>} : vector<20x56xi32>
    %5 = vector.broadcast %1 : vector<20x1xi32> to vector<20x56xi32>
    %6 = arith.cmpi eq, %4, %5 : vector<20x56xi32>
    %7 = arith.extui %6 : vector<20x56xi1> to vector<20x56xi32>
    %8 = arith.sitofp %7 : vector<20x56xi32> to vector<20x56xf32>
    %9 = arith.truncf %8 : vector<20x56xf32> to vector<20x56xbf16>
    %10 = tpu.iota {dimensions = array<i32: 1>} : vector<16x48xi32>
    %11 = vector.broadcast %3 : vector<16x1xi32> to vector<16x48xi32>
    %12 = arith.cmpi eq, %10, %11 : vector<16x48xi32>
    %13 = arith.extui %12 : vector<16x48xi1> to vector<16x48xi32>
    %14 = arith.sitofp %13 : vector<16x48xi32> to vector<16x48xf32>
    %15 = arith.truncf %14 : vector<16x48xf32> to vector<16x48xbf16>
    %c0_5 = arith.constant 0 : index
    %c0_6 = arith.constant 0 : index
    %16 = vector.load %arg4[%c0_5, %c0_6] : memref<552x128xbf16, #tpu.memory_space<vmem>>, vector<56x32xbf16>
    %cst = arith.constant dense<0.000000e+00> : vector<20x32xf32>
    %17 = tpu.matmul %9, %16, %cst {dimension_numbers = #tpu.dot_dimension_numbers<[1], [0], [0], [1], [0, 0, 1, 1], [], []>} : vector<20x56xbf16>, vector<56x32xbf16>, vector<20x32xf32> -> vector<20x32xf32>
    %c0_7 = arith.constant 0 : index
    %c0_8 = arith.constant 0 : index
    %18 = vector.load %arg5[%c0_7, %c0_8] : memref<280x128xf32, #tpu.memory_space<vmem>>, vector<20x32xf32>
    %19 = arith.addf %17, %18 : vector<20x32xf32>
    %c56 = arith.constant 56 : index
    %c0_9 = arith.constant 0 : index
    %20 = vector.load %arg4[%c56, %c0_9] : memref<552x128xbf16, #tpu.memory_space<vmem>>, vector<48x32xbf16>
    %cst_10 = arith.constant dense<0.000000e+00> : vector<16x32xf32>
    %21 = tpu.matmul %15, %20, %cst_10 {dimension_numbers = #tpu.dot_dimension_numbers<[1], [0], [0], [1], [0, 0, 1, 1], [], []>} : vector<16x48xbf16>, vector<48x32xbf16>, vector<16x32xf32> -> vector<16x32xf32>
    %c24 = arith.constant 24 : index
    %c0_11 = arith.constant 0 : index
    %22 = vector.load %arg5[%c24, %c0_11] : memref<280x128xf32, #tpu.memory_space<vmem>>, vector<16x32xf32>
    %23 = arith.addf %21, %22 : vector<16x32xf32>
    %c0_12 = arith.constant 0 : index
    %c0_13 = arith.constant 0 : index
    %c0_14 = arith.constant 0 : index
    %24 = vector.load %arg3[%c0_12, %c0_13, %c0_14] : memref<1x20x20xf32, #tpu.memory_space<vmem>>, vector<1x20x20xf32>
    %25 = vector.shape_cast %24 : vector<1x20x20xf32> to vector<20x20xf32>
    %c40 = arith.constant 40 : index
    %c0_15 = arith.constant 0 : index
    %26 = vector.load %arg5[%c40, %c0_15] : memref<280x128xf32, #tpu.memory_space<vmem>>, vector<16x16xf32>
    %c56_16 = arith.constant 56 : index
    %c0_17 = arith.constant 0 : index
    %27 = vector.load %arg5[%c56_16, %c0_17] : memref<280x128xf32, #tpu.memory_space<vmem>>, vector<16x20xf32>
    %c104 = arith.constant 104 : index
    %c0_18 = arith.constant 0 : index
    %28 = vector.load %arg4[%c104, %c0_18] : memref<552x128xbf16, #tpu.memory_space<vmem>>, vector<32x96xbf16>
    %c72 = arith.constant 72 : index
    %c0_19 = arith.constant 0 : index
    %29 = vector.load %arg5[%c72, %c0_19] : memref<280x128xf32, #tpu.memory_space<vmem>>, vector<1x96xf32>
    %c136 = arith.constant 136 : index
    %c0_20 = arith.constant 0 : index
    %30 = vector.load %arg4[%c136, %c0_20] : memref<552x128xbf16, #tpu.memory_space<vmem>>, vector<32x32xbf16>
    %c80 = arith.constant 80 : index
    %c0_21 = arith.constant 0 : index
    %31 = vector.load %arg5[%c80, %c0_21] : memref<280x128xf32, #tpu.memory_space<vmem>>, vector<1x32xf32>
    %32 = arith.truncf %19 : vector<20x32xf32> to vector<20x32xbf16>
    %cst_22 = arith.constant dense<0.000000e+00> : vector<20x96xf32>
    %33 = tpu.matmul %32, %28, %cst_22 {dimension_numbers = #tpu.dot_dimension_numbers<[1], [0], [0], [1], [0, 0, 1, 1], [], []>} : vector<20x32xbf16>, vector<32x96xbf16>, vector<20x96xf32> -> vector<20x96xf32>
    %34 = vector.broadcast %29 : vector<1x96xf32> to vector<20x96xf32>
    %35 = arith.addf %33, %34 : vector<20x96xf32>
    %36 = arith.truncf %35 : vector<20x96xf32> to vector<20x96xbf16>
    %37 = vector.extract_strided_slice %36 {offsets = [0, 0], sizes = [20, 32], strides = [1, 1]} : vector<20x96xbf16> to vector<20x32xbf16>
    %38 = vector.extract_strided_slice %36 {offsets = [0, 32], sizes = [20, 32], strides = [1, 1]} : vector<20x96xbf16> to vector<20x32xbf16>
    %39 = vector.extract_strided_slice %36 {offsets = [0, 64], sizes = [20, 32], strides = [1, 1]} : vector<20x96xbf16> to vector<20x32xbf16>
    %cst_23 = arith.constant dense<0.000000e+00> : vector<20x20xf32>
    %40 = tpu.matmul %37, %38, %cst_23 {dimension_numbers = #tpu.dot_dimension_numbers<[1], [1], [0], [0], [0, 0, 1, 0], [], []>} : vector<20x32xbf16>, vector<20x32xbf16>, vector<20x20xf32> -> vector<20x20xf32>
    %41 = arith.addf %40, %25 : vector<20x20xf32>
    %cst_24 = arith.constant dense<0xFF800000> : vector<20xf32>
    %42 = vector.multi_reduction <maximumf>, %41, %cst_24 [1] : vector<20x20xf32> to vector<20xf32>
    %43 = vector.shape_cast %42 : vector<20xf32> to vector<20x1xf32>
    %44 = vector.broadcast %43 : vector<20x1xf32> to vector<20x20xf32>
    %45 = arith.subf %41, %44 : vector<20x20xf32>
    %46 = math.exp %45 : vector<20x20xf32>
    %cst_25 = arith.constant dense<0.000000e+00> : vector<20xf32>
    %47 = vector.multi_reduction <add>, %46, %cst_25 [1] : vector<20x20xf32> to vector<20xf32>
    %48 = vector.shape_cast %47 : vector<20xf32> to vector<20x1xf32>
    %49 = vector.broadcast %48 : vector<20x1xf32> to vector<20x20xf32>
    %50 = arith.divf %46, %49 : vector<20x20xf32>
    %51 = arith.truncf %50 : vector<20x20xf32> to vector<20x20xbf16>
    %cst_26 = arith.constant dense<0.000000e+00> : vector<20x32xf32>
    %52 = tpu.matmul %51, %39, %cst_26 {dimension_numbers = #tpu.dot_dimension_numbers<[1], [0], [0], [1], [0, 0, 1, 1], [], []>} : vector<20x20xbf16>, vector<20x32xbf16>, vector<20x32xf32> -> vector<20x32xf32>
    %53 = arith.truncf %52 : vector<20x32xf32> to vector<20x32xbf16>
    %cst_27 = arith.constant dense<0.000000e+00> : vector<20x32xf32>
    %54 = tpu.matmul %53, %30, %cst_27 {dimension_numbers = #tpu.dot_dimension_numbers<[1], [0], [0], [1], [0, 0, 1, 1], [], []>} : vector<20x32xbf16>, vector<32x32xbf16>, vector<20x32xf32> -> vector<20x32xf32>
    %55 = vector.broadcast %31 : vector<1x32xf32> to vector<20x32xf32>
    %56 = arith.addf %54, %55 : vector<20x32xf32>
    %57 = arith.addf %19, %56 : vector<20x32xf32>
    %c104_28 = arith.constant 104 : index
    %c0_29 = arith.constant 0 : index
    %58 = vector.load %arg5[%c104_28, %c0_29] : memref<280x128xf32, #tpu.memory_space<vmem>>, vector<1x32xf32>
    %c112 = arith.constant 112 : index
    %c0_30 = arith.constant 0 : index
    %59 = vector.load %arg5[%c112, %c0_30] : memref<280x128xf32, #tpu.memory_space<vmem>>, vector<1x32xf32>
    %cst_31 = arith.constant dense<0.000000e+00> : vector<20xf32>
    %60 = vector.multi_reduction <add>, %57, %cst_31 [1] : vector<20x32xf32> to vector<20xf32>
    %61 = vector.shape_cast %60 : vector<20xf32> to vector<20x1xf32>
    %cst_32 = arith.constant 3.200000e+01 : f32
    %62 = vector.broadcast %cst_32 : f32 to vector<20x1xf32>
    %63 = arith.divf %61, %62 : vector<20x1xf32>
    %64 = vector.broadcast %63 : vector<20x1xf32> to vector<20x32xf32>
    %65 = arith.subf %57, %64 : vector<20x32xf32>
    %66 = arith.mulf %65, %65 : vector<20x32xf32>
    %cst_33 = arith.constant dense<0.000000e+00> : vector<20xf32>
    %67 = vector.multi_reduction <add>, %66, %cst_33 [1] : vector<20x32xf32> to vector<20xf32>
    %68 = vector.shape_cast %67 : vector<20xf32> to vector<20x1xf32>
    %cst_34 = arith.constant 3.200000e+01 : f32
    %69 = vector.broadcast %cst_34 : f32 to vector<20x1xf32>
    %70 = arith.divf %68, %69 : vector<20x1xf32>
    %71 = vector.broadcast %63 : vector<20x1xf32> to vector<20x32xf32>
    %72 = arith.subf %57, %71 : vector<20x32xf32>
    %cst_35 = arith.constant 9.99999974E-6 : f32
    %73 = vector.broadcast %cst_35 : f32 to vector<20x1xf32>
    %74 = arith.addf %70, %73 : vector<20x1xf32>
    %75 = math.rsqrt %74 : vector<20x1xf32>
    %76 = vector.broadcast %75 : vector<20x1xf32> to vector<20x32xf32>
    %77 = arith.mulf %72, %76 : vector<20x32xf32>
    %78 = vector.broadcast %58 : vector<1x32xf32> to vector<20x32xf32>
    %79 = arith.mulf %77, %78 : vector<20x32xf32>
    %80 = vector.broadcast %59 : vector<1x32xf32> to vector<20x32xf32>
    %81 = arith.addf %79, %80 : vector<20x32xf32>
    %c168 = arith.constant 168 : index
    %c0_36 = arith.constant 0 : index
    %82 = vector.load %arg4[%c168, %c0_36] : memref<552x128xbf16, #tpu.memory_space<vmem>>, vector<32x64xbf16>
    %c88 = arith.constant 88 : index
    %c0_37 = arith.constant 0 : index
    %83 = vector.load %arg5[%c88, %c0_37] : memref<280x128xf32, #tpu.memory_space<vmem>>, vector<1x64xf32>
    %c200 = arith.constant 200 : index
    %c0_38 = arith.constant 0 : index
    %84 = vector.load %arg4[%c200, %c0_38] : memref<552x128xbf16, #tpu.memory_space<vmem>>, vector<64x32xbf16>
    %c96 = arith.constant 96 : index
    %c0_39 = arith.constant 0 : index
    %85 = vector.load %arg5[%c96, %c0_39] : memref<280x128xf32, #tpu.memory_space<vmem>>, vector<1x32xf32>
    %86 = arith.truncf %81 : vector<20x32xf32> to vector<20x32xbf16>
    %cst_40 = arith.constant dense<0.000000e+00> : vector<20x64xf32>
    %87 = tpu.matmul %86, %82, %cst_40 {dimension_numbers = #tpu.dot_dimension_numbers<[1], [0], [0], [1], [0, 0, 1, 1], [], []>} : vector<20x32xbf16>, vector<32x64xbf16>, vector<20x64xf32> -> vector<20x64xf32>
    %88 = vector.broadcast %83 : vector<1x64xf32> to vector<20x64xf32>
    %89 = arith.addf %87, %88 : vector<20x64xf32>
    %cst_41 = arith.constant 0.000000e+00 : f32
    %90 = vector.broadcast %cst_41 : f32 to vector<20x64xf32>
    %91 = arith.maximumf %89, %90 : vector<20x64xf32>
    %92 = arith.truncf %91 : vector<20x64xf32> to vector<20x64xbf16>
    %cst_42 = arith.constant dense<0.000000e+00> : vector<20x32xf32>
    %93 = tpu.matmul %92, %84, %cst_42 {dimension_numbers = #tpu.dot_dimension_numbers<[1], [0], [0], [1], [0, 0, 1, 1], [], []>} : vector<20x64xbf16>, vector<64x32xbf16>, vector<20x32xf32> -> vector<20x32xf32>
    %94 = vector.broadcast %85 : vector<1x32xf32> to vector<20x32xf32>
    %95 = arith.addf %93, %94 : vector<20x32xf32>
    %96 = arith.addf %81, %95 : vector<20x32xf32>
    %c120 = arith.constant 120 : index
    %c0_43 = arith.constant 0 : index
    %97 = vector.load %arg5[%c120, %c0_43] : memref<280x128xf32, #tpu.memory_space<vmem>>, vector<1x32xf32>
    %c128 = arith.constant 128 : index
    %c0_44 = arith.constant 0 : index
    %98 = vector.load %arg5[%c128, %c0_44] : memref<280x128xf32, #tpu.memory_space<vmem>>, vector<1x32xf32>
    %cst_45 = arith.constant dense<0.000000e+00> : vector<20xf32>
    %99 = vector.multi_reduction <add>, %96, %cst_45 [1] : vector<20x32xf32> to vector<20xf32>
    %100 = vector.shape_cast %99 : vector<20xf32> to vector<20x1xf32>
    %cst_46 = arith.constant 3.200000e+01 : f32
    %101 = vector.broadcast %cst_46 : f32 to vector<20x1xf32>
    %102 = arith.divf %100, %101 : vector<20x1xf32>
    %103 = vector.broadcast %102 : vector<20x1xf32> to vector<20x32xf32>
    %104 = arith.subf %96, %103 : vector<20x32xf32>
    %105 = arith.mulf %104, %104 : vector<20x32xf32>
    %cst_47 = arith.constant dense<0.000000e+00> : vector<20xf32>
    %106 = vector.multi_reduction <add>, %105, %cst_47 [1] : vector<20x32xf32> to vector<20xf32>
    %107 = vector.shape_cast %106 : vector<20xf32> to vector<20x1xf32>
    %cst_48 = arith.constant 3.200000e+01 : f32
    %108 = vector.broadcast %cst_48 : f32 to vector<20x1xf32>
    %109 = arith.divf %107, %108 : vector<20x1xf32>
    %110 = vector.broadcast %102 : vector<20x1xf32> to vector<20x32xf32>
    %111 = arith.subf %96, %110 : vector<20x32xf32>
    %cst_49 = arith.constant 9.99999974E-6 : f32
    %112 = vector.broadcast %cst_49 : f32 to vector<20x1xf32>
    %113 = arith.addf %109, %112 : vector<20x1xf32>
    %114 = math.rsqrt %113 : vector<20x1xf32>
    %115 = vector.broadcast %114 : vector<20x1xf32> to vector<20x32xf32>
    %116 = arith.mulf %111, %115 : vector<20x32xf32>
    %117 = vector.broadcast %97 : vector<1x32xf32> to vector<20x32xf32>
    %118 = arith.mulf %116, %117 : vector<20x32xf32>
    %119 = vector.broadcast %98 : vector<1x32xf32> to vector<20x32xf32>
    %120 = arith.addf %118, %119 : vector<20x32xf32>
    %c136_50 = arith.constant 136 : index
    %c0_51 = arith.constant 0 : index
    %121 = vector.load %arg5[%c136_50, %c0_51] : memref<280x128xf32, #tpu.memory_space<vmem>>, vector<1x32xf32>
    %c144 = arith.constant 144 : index
    %c0_52 = arith.constant 0 : index
    %122 = vector.load %arg5[%c144, %c0_52] : memref<280x128xf32, #tpu.memory_space<vmem>>, vector<1x32xf32>
    %cst_53 = arith.constant dense<0.000000e+00> : vector<20xf32>
    %123 = vector.multi_reduction <add>, %120, %cst_53 [1] : vector<20x32xf32> to vector<20xf32>
    %124 = vector.shape_cast %123 : vector<20xf32> to vector<20x1xf32>
    %cst_54 = arith.constant 3.200000e+01 : f32
    %125 = vector.broadcast %cst_54 : f32 to vector<20x1xf32>
    %126 = arith.divf %124, %125 : vector<20x1xf32>
    %127 = vector.broadcast %126 : vector<20x1xf32> to vector<20x32xf32>
    %128 = arith.subf %120, %127 : vector<20x32xf32>
    %129 = arith.mulf %128, %128 : vector<20x32xf32>
    %cst_55 = arith.constant dense<0.000000e+00> : vector<20xf32>
    %130 = vector.multi_reduction <add>, %129, %cst_55 [1] : vector<20x32xf32> to vector<20xf32>
    %131 = vector.shape_cast %130 : vector<20xf32> to vector<20x1xf32>
    %cst_56 = arith.constant 3.200000e+01 : f32
    %132 = vector.broadcast %cst_56 : f32 to vector<20x1xf32>
    %133 = arith.divf %131, %132 : vector<20x1xf32>
    %134 = vector.broadcast %126 : vector<20x1xf32> to vector<20x32xf32>
    %135 = arith.subf %120, %134 : vector<20x32xf32>
    %cst_57 = arith.constant 9.99999974E-6 : f32
    %136 = vector.broadcast %cst_57 : f32 to vector<20x1xf32>
    %137 = arith.addf %133, %136 : vector<20x1xf32>
    %138 = math.rsqrt %137 : vector<20x1xf32>
    %139 = vector.broadcast %138 : vector<20x1xf32> to vector<20x32xf32>
    %140 = arith.mulf %135, %139 : vector<20x32xf32>
    %141 = vector.broadcast %121 : vector<1x32xf32> to vector<20x32xf32>
    %142 = arith.mulf %140, %141 : vector<20x32xf32>
    %143 = vector.broadcast %122 : vector<1x32xf32> to vector<20x32xf32>
    %144 = arith.addf %142, %143 : vector<20x32xf32>
    %c264 = arith.constant 264 : index
    %c0_58 = arith.constant 0 : index
    %145 = vector.load %arg4[%c264, %c0_58] : memref<552x128xbf16, #tpu.memory_space<vmem>>, vector<32x96xbf16>
    %c152 = arith.constant 152 : index
    %c0_59 = arith.constant 0 : index
    %146 = vector.load %arg5[%c152, %c0_59] : memref<280x128xf32, #tpu.memory_space<vmem>>, vector<1x96xf32>
    %c296 = arith.constant 296 : index
    %c0_60 = arith.constant 0 : index
    %147 = vector.load %arg4[%c296, %c0_60] : memref<552x128xbf16, #tpu.memory_space<vmem>>, vector<32x32xbf16>
    %c160 = arith.constant 160 : index
    %c0_61 = arith.constant 0 : index
    %148 = vector.load %arg5[%c160, %c0_61] : memref<280x128xf32, #tpu.memory_space<vmem>>, vector<1x32xf32>
    %149 = arith.truncf %23 : vector<16x32xf32> to vector<16x32xbf16>
    %cst_62 = arith.constant dense<0.000000e+00> : vector<16x96xf32>
    %150 = tpu.matmul %149, %145, %cst_62 {dimension_numbers = #tpu.dot_dimension_numbers<[1], [0], [0], [1], [0, 0, 1, 1], [], []>} : vector<16x32xbf16>, vector<32x96xbf16>, vector<16x96xf32> -> vector<16x96xf32>
    %151 = vector.broadcast %146 : vector<1x96xf32> to vector<16x96xf32>
    %152 = arith.addf %150, %151 : vector<16x96xf32>
    %153 = arith.truncf %152 : vector<16x96xf32> to vector<16x96xbf16>
    %154 = vector.extract_strided_slice %153 {offsets = [0, 0], sizes = [16, 32], strides = [1, 1]} : vector<16x96xbf16> to vector<16x32xbf16>
    %155 = vector.extract_strided_slice %153 {offsets = [0, 32], sizes = [16, 32], strides = [1, 1]} : vector<16x96xbf16> to vector<16x32xbf16>
    %156 = vector.extract_strided_slice %153 {offsets = [0, 64], sizes = [16, 32], strides = [1, 1]} : vector<16x96xbf16> to vector<16x32xbf16>
    %cst_63 = arith.constant dense<0.000000e+00> : vector<16x16xf32>
    %157 = tpu.matmul %154, %155, %cst_63 {dimension_numbers = #tpu.dot_dimension_numbers<[1], [1], [0], [0], [0, 0, 1, 0], [], []>} : vector<16x32xbf16>, vector<16x32xbf16>, vector<16x16xf32> -> vector<16x16xf32>
    %158 = arith.addf %157, %26 : vector<16x16xf32>
    %cst_64 = arith.constant dense<0xFF800000> : vector<16xf32>
    %159 = vector.multi_reduction <maximumf>, %158, %cst_64 [1] : vector<16x16xf32> to vector<16xf32>
    %160 = vector.shape_cast %159 : vector<16xf32> to vector<16x1xf32>
    %161 = vector.broadcast %160 : vector<16x1xf32> to vector<16x16xf32>
    %162 = arith.subf %158, %161 : vector<16x16xf32>
    %163 = math.exp %162 : vector<16x16xf32>
    %cst_65 = arith.constant dense<0.000000e+00> : vector<16xf32>
    %164 = vector.multi_reduction <add>, %163, %cst_65 [1] : vector<16x16xf32> to vector<16xf32>
    %165 = vector.shape_cast %164 : vector<16xf32> to vector<16x1xf32>
    %166 = vector.broadcast %165 : vector<16x1xf32> to vector<16x16xf32>
    %167 = arith.divf %163, %166 : vector<16x16xf32>
    %168 = arith.truncf %167 : vector<16x16xf32> to vector<16x16xbf16>
    %cst_66 = arith.constant dense<0.000000e+00> : vector<16x32xf32>
    %169 = tpu.matmul %168, %156, %cst_66 {dimension_numbers = #tpu.dot_dimension_numbers<[1], [0], [0], [1], [0, 0, 1, 1], [], []>} : vector<16x16xbf16>, vector<16x32xbf16>, vector<16x32xf32> -> vector<16x32xf32>
    %170 = arith.truncf %169 : vector<16x32xf32> to vector<16x32xbf16>
    %cst_67 = arith.constant dense<0.000000e+00> : vector<16x32xf32>
    %171 = tpu.matmul %170, %147, %cst_67 {dimension_numbers = #tpu.dot_dimension_numbers<[1], [0], [0], [1], [0, 0, 1, 1], [], []>} : vector<16x32xbf16>, vector<32x32xbf16>, vector<16x32xf32> -> vector<16x32xf32>
    %172 = vector.broadcast %148 : vector<1x32xf32> to vector<16x32xf32>
    %173 = arith.addf %171, %172 : vector<16x32xf32>
    %174 = arith.addf %23, %173 : vector<16x32xf32>
    %c208 = arith.constant 208 : index
    %c0_68 = arith.constant 0 : index
    %175 = vector.load %arg5[%c208, %c0_68] : memref<280x128xf32, #tpu.memory_space<vmem>>, vector<1x32xf32>
    %c216 = arith.constant 216 : index
    %c0_69 = arith.constant 0 : index
    %176 = vector.load %arg5[%c216, %c0_69] : memref<280x128xf32, #tpu.memory_space<vmem>>, vector<1x32xf32>
    %cst_70 = arith.constant dense<0.000000e+00> : vector<16xf32>
    %177 = vector.multi_reduction <add>, %174, %cst_70 [1] : vector<16x32xf32> to vector<16xf32>
    %178 = vector.shape_cast %177 : vector<16xf32> to vector<16x1xf32>
    %cst_71 = arith.constant 3.200000e+01 : f32
    %179 = vector.broadcast %cst_71 : f32 to vector<16x1xf32>
    %180 = arith.divf %178, %179 : vector<16x1xf32>
    %181 = vector.broadcast %180 : vector<16x1xf32> to vector<16x32xf32>
    %182 = arith.subf %174, %181 : vector<16x32xf32>
    %183 = arith.mulf %182, %182 : vector<16x32xf32>
    %cst_72 = arith.constant dense<0.000000e+00> : vector<16xf32>
    %184 = vector.multi_reduction <add>, %183, %cst_72 [1] : vector<16x32xf32> to vector<16xf32>
    %185 = vector.shape_cast %184 : vector<16xf32> to vector<16x1xf32>
    %cst_73 = arith.constant 3.200000e+01 : f32
    %186 = vector.broadcast %cst_73 : f32 to vector<16x1xf32>
    %187 = arith.divf %185, %186 : vector<16x1xf32>
    %188 = vector.broadcast %180 : vector<16x1xf32> to vector<16x32xf32>
    %189 = arith.subf %174, %188 : vector<16x32xf32>
    %cst_74 = arith.constant 9.99999974E-6 : f32
    %190 = vector.broadcast %cst_74 : f32 to vector<16x1xf32>
    %191 = arith.addf %187, %190 : vector<16x1xf32>
    %192 = math.rsqrt %191 : vector<16x1xf32>
    %193 = vector.broadcast %192 : vector<16x1xf32> to vector<16x32xf32>
    %194 = arith.mulf %189, %193 : vector<16x32xf32>
    %195 = vector.broadcast %175 : vector<1x32xf32> to vector<16x32xf32>
    %196 = arith.mulf %194, %195 : vector<16x32xf32>
    %197 = vector.broadcast %176 : vector<1x32xf32> to vector<16x32xf32>
    %198 = arith.addf %196, %197 : vector<16x32xf32>
    %c328 = arith.constant 328 : index
    %c0_75 = arith.constant 0 : index
    %199 = vector.load %arg4[%c328, %c0_75] : memref<552x128xbf16, #tpu.memory_space<vmem>>, vector<32x32xbf16>
    %c168_76 = arith.constant 168 : index
    %c0_77 = arith.constant 0 : index
    %200 = vector.load %arg5[%c168_76, %c0_77] : memref<280x128xf32, #tpu.memory_space<vmem>>, vector<1x32xf32>
    %201 = arith.truncf %198 : vector<16x32xf32> to vector<16x32xbf16>
    %cst_78 = arith.constant dense<0.000000e+00> : vector<16x32xf32>
    %202 = tpu.matmul %201, %199, %cst_78 {dimension_numbers = #tpu.dot_dimension_numbers<[1], [0], [0], [1], [0, 0, 1, 1], [], []>} : vector<16x32xbf16>, vector<32x32xbf16>, vector<16x32xf32> -> vector<16x32xf32>
    %203 = vector.broadcast %200 : vector<1x32xf32> to vector<16x32xf32>
    %204 = arith.addf %202, %203 : vector<16x32xf32>
    %205 = arith.truncf %204 : vector<16x32xf32> to vector<16x32xbf16>
    %c360 = arith.constant 360 : index
    %c0_79 = arith.constant 0 : index
    %206 = vector.load %arg4[%c360, %c0_79] : memref<552x128xbf16, #tpu.memory_space<vmem>>, vector<32x64xbf16>
    %c176 = arith.constant 176 : index
    %c0_80 = arith.constant 0 : index
    %207 = vector.load %arg5[%c176, %c0_80] : memref<280x128xf32, #tpu.memory_space<vmem>>, vector<1x64xf32>
    %208 = arith.truncf %144 : vector<20x32xf32> to vector<20x32xbf16>
    %cst_81 = arith.constant dense<0.000000e+00> : vector<20x64xf32>
    %209 = tpu.matmul %208, %206, %cst_81 {dimension_numbers = #tpu.dot_dimension_numbers<[1], [0], [0], [1], [0, 0, 1, 1], [], []>} : vector<20x32xbf16>, vector<32x64xbf16>, vector<20x64xf32> -> vector<20x64xf32>
    %210 = vector.broadcast %207 : vector<1x64xf32> to vector<20x64xf32>
    %211 = arith.addf %209, %210 : vector<20x64xf32>
    %212 = arith.truncf %211 : vector<20x64xf32> to vector<20x64xbf16>
    %213 = vector.extract_strided_slice %212 {offsets = [0, 0], sizes = [20, 32], strides = [1, 1]} : vector<20x64xbf16> to vector<20x32xbf16>
    %214 = vector.extract_strided_slice %212 {offsets = [0, 32], sizes = [20, 32], strides = [1, 1]} : vector<20x64xbf16> to vector<20x32xbf16>
    %c392 = arith.constant 392 : index
    %c0_82 = arith.constant 0 : index
    %215 = vector.load %arg4[%c392, %c0_82] : memref<552x128xbf16, #tpu.memory_space<vmem>>, vector<32x32xbf16>
    %c184 = arith.constant 184 : index
    %c0_83 = arith.constant 0 : index
    %216 = vector.load %arg5[%c184, %c0_83] : memref<280x128xf32, #tpu.memory_space<vmem>>, vector<1x32xf32>
    %cst_84 = arith.constant dense<0.000000e+00> : vector<16x20xf32>
    %217 = tpu.matmul %205, %213, %cst_84 {dimension_numbers = #tpu.dot_dimension_numbers<[1], [1], [0], [0], [0, 0, 1, 0], [], []>} : vector<16x32xbf16>, vector<20x32xbf16>, vector<16x20xf32> -> vector<16x20xf32>
    %218 = arith.addf %217, %27 : vector<16x20xf32>
    %cst_85 = arith.constant dense<0xFF800000> : vector<16xf32>
    %219 = vector.multi_reduction <maximumf>, %218, %cst_85 [1] : vector<16x20xf32> to vector<16xf32>
    %220 = vector.shape_cast %219 : vector<16xf32> to vector<16x1xf32>
    %221 = vector.broadcast %220 : vector<16x1xf32> to vector<16x20xf32>
    %222 = arith.subf %218, %221 : vector<16x20xf32>
    %223 = math.exp %222 : vector<16x20xf32>
    %cst_86 = arith.constant dense<0.000000e+00> : vector<16xf32>
    %224 = vector.multi_reduction <add>, %223, %cst_86 [1] : vector<16x20xf32> to vector<16xf32>
    %225 = vector.shape_cast %224 : vector<16xf32> to vector<16x1xf32>
    %226 = vector.broadcast %225 : vector<16x1xf32> to vector<16x20xf32>
    %227 = arith.divf %223, %226 : vector<16x20xf32>
    %228 = arith.truncf %227 : vector<16x20xf32> to vector<16x20xbf16>
    %cst_87 = arith.constant dense<0.000000e+00> : vector<16x32xf32>
    %229 = tpu.matmul %228, %214, %cst_87 {dimension_numbers = #tpu.dot_dimension_numbers<[1], [0], [0], [1], [0, 0, 1, 1], [], []>} : vector<16x20xbf16>, vector<20x32xbf16>, vector<16x32xf32> -> vector<16x32xf32>
    %230 = arith.truncf %229 : vector<16x32xf32> to vector<16x32xbf16>
    %cst_88 = arith.constant dense<0.000000e+00> : vector<16x32xf32>
    %231 = tpu.matmul %230, %215, %cst_88 {dimension_numbers = #tpu.dot_dimension_numbers<[1], [0], [0], [1], [0, 0, 1, 1], [], []>} : vector<16x32xbf16>, vector<32x32xbf16>, vector<16x32xf32> -> vector<16x32xf32>
    %232 = vector.broadcast %216 : vector<1x32xf32> to vector<16x32xf32>
    %233 = arith.addf %231, %232 : vector<16x32xf32>
    %234 = arith.addf %198, %233 : vector<16x32xf32>
    %c224 = arith.constant 224 : index
    %c0_89 = arith.constant 0 : index
    %235 = vector.load %arg5[%c224, %c0_89] : memref<280x128xf32, #tpu.memory_space<vmem>>, vector<1x32xf32>
    %c232 = arith.constant 232 : index
    %c0_90 = arith.constant 0 : index
    %236 = vector.load %arg5[%c232, %c0_90] : memref<280x128xf32, #tpu.memory_space<vmem>>, vector<1x32xf32>
    %cst_91 = arith.constant dense<0.000000e+00> : vector<16xf32>
    %237 = vector.multi_reduction <add>, %234, %cst_91 [1] : vector<16x32xf32> to vector<16xf32>
    %238 = vector.shape_cast %237 : vector<16xf32> to vector<16x1xf32>
    %cst_92 = arith.constant 3.200000e+01 : f32
    %239 = vector.broadcast %cst_92 : f32 to vector<16x1xf32>
    %240 = arith.divf %238, %239 : vector<16x1xf32>
    %241 = vector.broadcast %240 : vector<16x1xf32> to vector<16x32xf32>
    %242 = arith.subf %234, %241 : vector<16x32xf32>
    %243 = arith.mulf %242, %242 : vector<16x32xf32>
    %cst_93 = arith.constant dense<0.000000e+00> : vector<16xf32>
    %244 = vector.multi_reduction <add>, %243, %cst_93 [1] : vector<16x32xf32> to vector<16xf32>
    %245 = vector.shape_cast %244 : vector<16xf32> to vector<16x1xf32>
    %cst_94 = arith.constant 3.200000e+01 : f32
    %246 = vector.broadcast %cst_94 : f32 to vector<16x1xf32>
    %247 = arith.divf %245, %246 : vector<16x1xf32>
    %248 = vector.broadcast %240 : vector<16x1xf32> to vector<16x32xf32>
    %249 = arith.subf %234, %248 : vector<16x32xf32>
    %cst_95 = arith.constant 9.99999974E-6 : f32
    %250 = vector.broadcast %cst_95 : f32 to vector<16x1xf32>
    %251 = arith.addf %247, %250 : vector<16x1xf32>
    %252 = math.rsqrt %251 : vector<16x1xf32>
    %253 = vector.broadcast %252 : vector<16x1xf32> to vector<16x32xf32>
    %254 = arith.mulf %249, %253 : vector<16x32xf32>
    %255 = vector.broadcast %235 : vector<1x32xf32> to vector<16x32xf32>
    %256 = arith.mulf %254, %255 : vector<16x32xf32>
    %257 = vector.broadcast %236 : vector<1x32xf32> to vector<16x32xf32>
    %258 = arith.addf %256, %257 : vector<16x32xf32>
    %c424 = arith.constant 424 : index
    %c0_96 = arith.constant 0 : index
    %259 = vector.load %arg4[%c424, %c0_96] : memref<552x128xbf16, #tpu.memory_space<vmem>>, vector<32x64xbf16>
    %c192 = arith.constant 192 : index
    %c0_97 = arith.constant 0 : index
    %260 = vector.load %arg5[%c192, %c0_97] : memref<280x128xf32, #tpu.memory_space<vmem>>, vector<1x64xf32>
    %c456 = arith.constant 456 : index
    %c0_98 = arith.constant 0 : index
    %261 = vector.load %arg4[%c456, %c0_98] : memref<552x128xbf16, #tpu.memory_space<vmem>>, vector<64x32xbf16>
    %c200_99 = arith.constant 200 : index
    %c0_100 = arith.constant 0 : index
    %262 = vector.load %arg5[%c200_99, %c0_100] : memref<280x128xf32, #tpu.memory_space<vmem>>, vector<1x32xf32>
    %263 = arith.truncf %258 : vector<16x32xf32> to vector<16x32xbf16>
    %cst_101 = arith.constant dense<0.000000e+00> : vector<16x64xf32>
    %264 = tpu.matmul %263, %259, %cst_101 {dimension_numbers = #tpu.dot_dimension_numbers<[1], [0], [0], [1], [0, 0, 1, 1], [], []>} : vector<16x32xbf16>, vector<32x64xbf16>, vector<16x64xf32> -> vector<16x64xf32>
    %265 = vector.broadcast %260 : vector<1x64xf32> to vector<16x64xf32>
    %266 = arith.addf %264, %265 : vector<16x64xf32>
    %cst_102 = arith.constant 0.000000e+00 : f32
    %267 = vector.broadcast %cst_102 : f32 to vector<16x64xf32>
    %268 = arith.maximumf %266, %267 : vector<16x64xf32>
    %269 = arith.truncf %268 : vector<16x64xf32> to vector<16x64xbf16>
    %cst_103 = arith.constant dense<0.000000e+00> : vector<16x32xf32>
    %270 = tpu.matmul %269, %261, %cst_103 {dimension_numbers = #tpu.dot_dimension_numbers<[1], [0], [0], [1], [0, 0, 1, 1], [], []>} : vector<16x64xbf16>, vector<64x32xbf16>, vector<16x32xf32> -> vector<16x32xf32>
    %271 = vector.broadcast %262 : vector<1x32xf32> to vector<16x32xf32>
    %272 = arith.addf %270, %271 : vector<16x32xf32>
    %273 = arith.addf %258, %272 : vector<16x32xf32>
    %c240 = arith.constant 240 : index
    %c0_104 = arith.constant 0 : index
    %274 = vector.load %arg5[%c240, %c0_104] : memref<280x128xf32, #tpu.memory_space<vmem>>, vector<1x32xf32>
    %c248 = arith.constant 248 : index
    %c0_105 = arith.constant 0 : index
    %275 = vector.load %arg5[%c248, %c0_105] : memref<280x128xf32, #tpu.memory_space<vmem>>, vector<1x32xf32>
    %cst_106 = arith.constant dense<0.000000e+00> : vector<16xf32>
    %276 = vector.multi_reduction <add>, %273, %cst_106 [1] : vector<16x32xf32> to vector<16xf32>
    %277 = vector.shape_cast %276 : vector<16xf32> to vector<16x1xf32>
    %cst_107 = arith.constant 3.200000e+01 : f32
    %278 = vector.broadcast %cst_107 : f32 to vector<16x1xf32>
    %279 = arith.divf %277, %278 : vector<16x1xf32>
    %280 = vector.broadcast %279 : vector<16x1xf32> to vector<16x32xf32>
    %281 = arith.subf %273, %280 : vector<16x32xf32>
    %282 = arith.mulf %281, %281 : vector<16x32xf32>
    %cst_108 = arith.constant dense<0.000000e+00> : vector<16xf32>
    %283 = vector.multi_reduction <add>, %282, %cst_108 [1] : vector<16x32xf32> to vector<16xf32>
    %284 = vector.shape_cast %283 : vector<16xf32> to vector<16x1xf32>
    %cst_109 = arith.constant 3.200000e+01 : f32
    %285 = vector.broadcast %cst_109 : f32 to vector<16x1xf32>
    %286 = arith.divf %284, %285 : vector<16x1xf32>
    %287 = vector.broadcast %279 : vector<16x1xf32> to vector<16x32xf32>
    %288 = arith.subf %273, %287 : vector<16x32xf32>
    %cst_110 = arith.constant 9.99999974E-6 : f32
    %289 = vector.broadcast %cst_110 : f32 to vector<16x1xf32>
    %290 = arith.addf %286, %289 : vector<16x1xf32>
    %291 = math.rsqrt %290 : vector<16x1xf32>
    %292 = vector.broadcast %291 : vector<16x1xf32> to vector<16x32xf32>
    %293 = arith.mulf %288, %292 : vector<16x32xf32>
    %294 = vector.broadcast %274 : vector<1x32xf32> to vector<16x32xf32>
    %295 = arith.mulf %293, %294 : vector<16x32xf32>
    %296 = vector.broadcast %275 : vector<1x32xf32> to vector<16x32xf32>
    %297 = arith.addf %295, %296 : vector<16x32xf32>
    %c256 = arith.constant 256 : index
    %c0_111 = arith.constant 0 : index
    %298 = vector.load %arg5[%c256, %c0_111] : memref<280x128xf32, #tpu.memory_space<vmem>>, vector<1x32xf32>
    %c264_112 = arith.constant 264 : index
    %c0_113 = arith.constant 0 : index
    %299 = vector.load %arg5[%c264_112, %c0_113] : memref<280x128xf32, #tpu.memory_space<vmem>>, vector<1x32xf32>
    %cst_114 = arith.constant dense<0.000000e+00> : vector<16xf32>
    %300 = vector.multi_reduction <add>, %297, %cst_114 [1] : vector<16x32xf32> to vector<16xf32>
    %301 = vector.shape_cast %300 : vector<16xf32> to vector<16x1xf32>
    %cst_115 = arith.constant 3.200000e+01 : f32
    %302 = vector.broadcast %cst_115 : f32 to vector<16x1xf32>
    %303 = arith.divf %301, %302 : vector<16x1xf32>
    %304 = vector.broadcast %303 : vector<16x1xf32> to vector<16x32xf32>
    %305 = arith.subf %297, %304 : vector<16x32xf32>
    %306 = arith.mulf %305, %305 : vector<16x32xf32>
    %cst_116 = arith.constant dense<0.000000e+00> : vector<16xf32>
    %307 = vector.multi_reduction <add>, %306, %cst_116 [1] : vector<16x32xf32> to vector<16xf32>
    %308 = vector.shape_cast %307 : vector<16xf32> to vector<16x1xf32>
    %cst_117 = arith.constant 3.200000e+01 : f32
    %309 = vector.broadcast %cst_117 : f32 to vector<16x1xf32>
    %310 = arith.divf %308, %309 : vector<16x1xf32>
    %311 = vector.broadcast %303 : vector<16x1xf32> to vector<16x32xf32>
    %312 = arith.subf %297, %311 : vector<16x32xf32>
    %cst_118 = arith.constant 9.99999974E-6 : f32
    %313 = vector.broadcast %cst_118 : f32 to vector<16x1xf32>
    %314 = arith.addf %310, %313 : vector<16x1xf32>
    %315 = math.rsqrt %314 : vector<16x1xf32>
    %316 = vector.broadcast %315 : vector<16x1xf32> to vector<16x32xf32>
    %317 = arith.mulf %312, %316 : vector<16x32xf32>
    %318 = vector.broadcast %298 : vector<1x32xf32> to vector<16x32xf32>
    %319 = arith.mulf %317, %318 : vector<16x32xf32>
    %320 = vector.broadcast %299 : vector<1x32xf32> to vector<16x32xf32>
    %321 = arith.addf %319, %320 : vector<16x32xf32>
    %c520 = arith.constant 520 : index
    %c0_119 = arith.constant 0 : index
    %322 = vector.load %arg4[%c520, %c0_119] : memref<552x128xbf16, #tpu.memory_space<vmem>>, vector<32x128xbf16>
    %c272 = arith.constant 272 : index
    %c0_120 = arith.constant 0 : index
    %323 = vector.load %arg5[%c272, %c0_120] : memref<280x128xf32, #tpu.memory_space<vmem>>, vector<1x128xf32>
    %324 = arith.truncf %321 : vector<16x32xf32> to vector<16x32xbf16>
    %cst_121 = arith.constant dense<0.000000e+00> : vector<16x128xf32>
    %325 = tpu.matmul %324, %322, %cst_121 {dimension_numbers = #tpu.dot_dimension_numbers<[1], [0], [0], [1], [0, 0, 1, 1], [], []>} : vector<16x32xbf16>, vector<32x128xbf16>, vector<16x128xf32> -> vector<16x128xf32>
    %326 = vector.broadcast %323 : vector<1x128xf32> to vector<16x128xf32>
    %327 = arith.addf %325, %326 : vector<16x128xf32>
    %c0_122 = arith.constant 0 : index
    %c0_123 = arith.constant 0 : index
    %c0_124 = arith.constant 0 : index
    %328 = vector.load %arg6[%c0_122, %c0_123, %c0_124] : memref<1x16x128xf32, #tpu.memory_space<vmem>>, vector<1x16x128xf32>
    %329 = vector.shape_cast %328 : vector<1x16x128xf32> to vector<16x128xf32>
    %330 = vector.shape_cast %327 : vector<16x128xf32> to vector<1x16x128xf32>
    tpu.vector_store %arg6[%c0_122, %c0_123, %c0_124], %330 {strides = array<i32>} : memref<1x16x128xf32, #tpu.memory_space<vmem>>, vector<1x16x128xf32>,
    return
  }
  func.func @transform_0(%arg0: i32) -> (i32, i32, i32) {
    %c0_i32 = arith.constant 0 : i32
    %c0_i32_0 = arith.constant 0 : i32
    %c0_i32_1 = arith.constant 0 : i32
    return %arg0, %c0_i32, %c0_i32_0 : i32, i32, i32
  }
  func.func @transform_1(%arg0: i32) -> (i32, i32, i32) {
    %c0_i32 = arith.constant 0 : i32
    %c0_i32_0 = arith.constant 0 : i32
    %c0_i32_1 = arith.constant 0 : i32
    return %arg0, %c0_i32, %c0_i32_0 : i32, i32, i32
  }
  func.func @transform_2(%arg0: i32) -> (i32, i32, i32) {
    %c0_i32 = arith.constant 0 : i32
    %c0_i32_0 = arith.constant 0 : i32
    %c0_i32_1 = arith.constant 0 : i32
    return %arg0, %c0_i32, %c0_i32_0 : i32, i32, i32
  }
  func.func @transform_3(%arg0: i32) -> (i32, i32) {
    %c0_i32 = arith.constant 0 : i32
    %c0_i32_0 = arith.constant 0 : i32
    %c0_i32_1 = arith.constant 0 : i32
    return %c0_i32, %c0_i32_0 : i32, i32
  }
  func.func @transform_4(%arg0: i32) -> (i32, i32) {
    %c0_i32 = arith.constant 0 : i32
    %c0_i32_0 = arith.constant 0 : i32
    %c0_i32_1 = arith.constant 0 : i32
    return %c0_i32, %c0_i32_0 : i32, i32
  }
  func.func @transform_5(%arg0: i32) -> (i32, i32, i32) {
    %c0_i32 = arith.constant 0 : i32
    %c0_i32_0 = arith.constant 0 : i32
    %c0_i32_1 = arith.constant 0 : i32
    return %arg0, %c0_i32, %c0_i32_0 : i32, i32, i32
  }
}

</mosaic_0001>

<bundles_post_ra>
// kernel: tpu_custom_call.1
= control target key start
LH: loop header
LB: loop body
LE: loop exit
PB: predicated region body
PF: predicated region fallthrough
CT: control target
= control target key end

     0   :  { %10 = vsyncpa [#allocation3], 0  ;;  %s2752_s0 = inlined_call_operand.vmem [shape: s32[1,20,1], index: 0, kind: input, shape index: {}]   ;;  %s2753_s1 = inlined_call_operand.vmem [shape: s32[1,16,1], index: 1, kind: input, shape index: {}]   ;;  %s2754_s2 = inlined_call_operand.vmem [shape: f32[1,20,20], index: 2, kind: input, shape index: {}]   ;;  %s2755_s3 = inlined_call_operand.hbm [shape: bf16[552,128], index: 3, kind: input, shape index: {}]   ;;  %s2756_s4 = inlined_call_operand.hbm [shape: f32[280,128], index: 4, kind: input, shape index: {}]   ;;  %s2757_s5 = inlined_call_operand.hbm [shape: f32[1,16,128], index: 5, kind: output, shape index: {}]  }
   0x1   :  { %11 = vsyncpa [#allocation6], 0 }
   0x2   :  { %12 = vsyncpa [#allocation4], 0  ;;  %s2446_s18 = smov [#allocation2]   ;;  %s2374_s22 = scalar_lea.hbm %s2755_s3, 4416 }
   0x3   :  { %s24_s19 = sshll.u32 %s2446_s18, 4  ;;  %p2375_p0 = scmp.ne.s32.totalorder %s2755_s3, %s2374_s22  ;;  %s25_s19 = int_to_ptr.vmem [resolvable:$true] %s24_s19 }
   0x4   :  { %p2378_p1 = scmp.lt.u32.totalorder %s2374_s22, %s2755_s3 }
   0x6   :  { %p2380_p2 = pnand %p2378_p1, %p2375_p0 }
   0x8   :  { %2383 = shalt.err (!%p2380_p2)
}
   0x9   :  { %s2384_s27 = scalar_lea.vmem %s25_s19, 4416  ;;  %p2389_p4 = scmp.lt.s32.totalorder %s25_s19, %s25_s19 }
   0xa   :  { %p2385_p3 = scmp.ne.s32.totalorder %s25_s19, %s2384_s27  ;;  %p2390_p5 = scmp.lt.s32.totalorder %s2384_s27, %s2384_s27 }
   0xc   :  { %p2391_p6 = por %p2390_p5, %p2389_p4 }
   0xe   :  { %p2392_p7 = pnand %p2391_p6, %p2385_p3 }
  0x10   :  { %2395 = shalt.err (!%p2392_p7)
}
  0x11   :  { %s2447_s28 = smov 64   ;;  %s2448_s29 = smov 4  }
  0x12   :  { %30 = dma.hbm_to_vmem [thread:$0]  %s2755_s3, 4416, %s25_s19, [#allocation3], %s2447_s28, %s2447_s28, %s2448_s29  }
  0x13   :  { %s2449_s7 = smov [#allocation5]   ;;  %s2396_s11 = scalar_lea.hbm %s2756_s4, 4480 }
  0x14   :  { %s36_s8 = sshll.u32 %s2449_s7, 4  ;;  %p2397_p8 = scmp.ne.s32.totalorder %s2756_s4, %s2396_s11  ;;  %s37_s8 = int_to_ptr.vmem [resolvable:$true] %s36_s8 }
  0x15   :  { %p2400_p9 = scmp.lt.u32.totalorder %s2396_s11, %s2756_s4 }
  0x17   :  { %p2402_p10 = pnand %p2400_p9, %p2397_p8 }
  0x19   :  { %2405 = shalt.err (!%p2402_p10)
}
  0x1a   :  { %s2406_s16 = scalar_lea.vmem %s37_s8, 4480  ;;  %p2411_p12 = scmp.lt.s32.totalorder %s37_s8, %s37_s8 }
  0x1b   :  { %p2407_p11 = scmp.ne.s32.totalorder %s37_s8, %s2406_s16  ;;  %p2412_p13 = scmp.lt.s32.totalorder %s2406_s16, %s2406_s16 }
  0x1d   :  { %p2413_p0 = por %p2412_p13, %p2411_p12 }
  0x1f   :  { %p2414_p1 = pnand %p2413_p0, %p2407_p11 }
  0x21   :  { %2417 = shalt.err (!%p2414_p1)
}
  0x22   :  { %s2450_s3 = smov 128   ;;  %s2451_s17 = smov 8  }
  0x23   :  { %42 = dma.hbm_to_vmem [thread:$0]  %s2756_s4, 4480, %s37_s8, [#allocation6], %s2450_s3, %s2450_s3, %s2451_s17  }
  0x24   :  { %2440 = dma.done.wait [#allocation3], 4416  }
  0x25   :  { %2441 = vsyncadd [#allocation3], 4294962880 }
  0x26   :  { %2442 = dma.done.wait [#allocation6], 4480  }
  0x27   :  { %2443 = vsyncadd [#allocation6], 4294962816  ;;  %v2452_v0 = vmov 0   ;;  %v2453_v1 = vmov 0.0   ;;  %v50_v2 = vld [vmem:[%s2752_s0] sm:$0xff]  ;;  %v51_v4 = vld [vmem:[%s2752_s0 + $0x8] sm:$0xff]  ;;  %v55_v15 = vlaneseq }
  0x28   :  { %2275 = vset.pattern.permute.xlu0 %v2452_v0  ;;  %2276 = vset.pattern.permute.xlu1 %v2452_v0  ;;  %v52_v3 = vld [vmem:[%s2752_s0 + $0x10] sm:$0xf]  ;;  %v53_v5 = vld [vmem:[%s2753_s1] sm:$0xff]  ;;  %v2278_v7 = vld [vmem:[#allocation2 + $0x8] sm:$0xff]   ;;  %vm128_vm0 = vcmask 1043456   ;;  %vm2454_vm1 = vmmov 0  }
  0x29   :  { %2102 = vmatprep.subr.bf16.mxu1 %v2453_v1  ;;  %58 = vperm.xlu0 %2275, %v50_v2   ;;  %v2277_v6 = vld [vmem:[#allocation2] sm:$0xff]   ;;  %v54_v8 = vld [vmem:[%s2753_s1 + $0x8] sm:$0xff]  ;;  %v2279_v10 = vld [vmem:[#allocation2 + $0x10] sm:$0xff]   ;;  %v56_v16 = vand.u32 127, %v55_v15  ;;  %vm121_vm5 = vcmask 457728   ;;  %vm206_vm8 = vcmask 392192  }
  0x2a   :  { %64 = vperm.xlu1 %2276, %v52_v3   ;;  %2090 = vmatprep.subr.bf16.mxu0 %v2277_v6  ;;  %v2280_v9 = vld [vmem:[#allocation2 + $0x1c] sm:$0xff]   ;;  %v2282_v11 = vld [vmem:[#allocation2 + $0x24] sm:$0xff]   ;;  %v2281_v12 = vld [vmem:[#allocation2 + $0x18] ss:$0 sps:$4 sm:$0xff]   ;;  %vm286_vm9 = vcmask 261120   ;;  %s2455_s0 = smov 96  }
  0x2b   :  { %2091 = vmatpush3.bf16.msra.mxu0 %v2277_v6  ;;  %2103 = vmatpush3.bf16.msra.mxu1 %v2280_v9  ;;  %v2283_v13 = vld [vmem:[#allocation2 + $0x2c] sm:$0xff]   ;;  %v130_v14 = vsel %vm128_vm0, %v2281_v12, 0  ;;  %v2284_v30 = vld [vmem:[#allocation2 + $0x34] sm:$0xff]   ;;  %v2285_v31 = vld [vmem:[#allocation2 + $0x3c] sm:$0xff]   ;;  %vm409_vm10 = vcmask 162816   ;;  %vm416_vm11 = vcmask 158720  }
  0x2c   :  { %2092 = vmatprep.subr.bf16.mxu0 %v2278_v7  ;;  %2104 = vmatprep.subr.bf16.mxu1 %v2453_v1  ;;  %v99_v32 = vld [vmem:[#allocation5 + $0x10] sm:$0xf]  ;;  %v97_v35 = vld [vmem:[#allocation5] sm:$0xff]  ;;  %v98_v36 = vld [vmem:[#allocation5 + $0x8] sm:$0xff]  ;;  %vm457_vm12 = vcmask 1041408   ;;  %vm592_vm13 = vcmask 257024  }
  0x2d   :  { %61 = vperm.xlu0 %2275, %v51_v4   ;;  %2108 = vmatprep.mubr.msk.bf16.mxu1 %vm2454_vm1, %v2453_v1  ;;  %v1938_v48 = vld [vmem:[#allocation5 + $0x48] ss:$0 sm:$0xff]  ;;  %v251_v62 = vld [vmem:[%s2754_s2] sm:$0xff]  ;;  %v252_v2 = vld [vmem:[%s2754_s2 + $0x8] sm:$0xff]  ;;  %vm760_vm14 = vcmask 523264   ;;  %vm1050_vm15 = vcmask 130048  }
  0x2e   :  { %78 = vperm.xlu1 %2276, %v53_v5   ;;  %v253_v5 = vld [vmem:[%s2754_s2 + $0x10] sm:$0xf]  ;;  %s2456_s2 = smov [#allocation7]  }
  0x2f   :  { %2093 = vmatpush3.bf16.msra.mxu0 %v2278_v7  ;;  %2105 = vmatpush3.bf16.msra.mxu1 %v2282_v11 }
  0x30   :  { %2094 = vmatprep.subr.bf16.mxu0 %v2279_v10  ;;  %2106 = vmatprep.subr.bf16.mxu1 %v2453_v1 }
  0x31   :  { %81 = vperm.xlu0 %2275, %v54_v8  }
  0x33   :  { %2095 = vmatpush3.bf16.msra.mxu0 %v2279_v10  ;;  %2107 = vmatpush3.bf16.msra.mxu1 %v2283_v13 }
  0x34   :  { %2260 = vmatprep.subr.msk.bf16.mxu0 %vm128_vm0, %v2281_v12  ;;  %2112 = vmatprep.subr.bf16.mxu1 %v2284_v30 }
  0x37   :  { %2097 = vmatpush3.bf16.msra.mxu0 %v130_v14 }
  0xa8   :  { %v59_v17 = vpop.permute.xlu0 %58 }
  0xa9   :  { %v65_v18 = vpop.permute.xlu1 %64  ;;  %vm66_vm3 = vcmp.eq.s32.totalorder %v56_v16, %v59_v17 }
  0xaa   :  { %vm68_vm2 = vcmp.eq.s32.totalorder %v56_v16, %v65_v18  ;;  %v1923_v22 = vsel %vm66_vm3, 1.0, %v2453_v1 }
  0xab   :  { %v1925_v19 = vsel %vm68_vm2, 1.0, %v2453_v1 }
  0xac   :  { %v62_v20 = vpop.permute.xlu0 %61  ;;  %v76_v23 = vpack.c.bf16 %v1925_v19, %v1925_v19 }
  0xad   :  { %v79_v21 = vpop.permute.xlu1 %78  ;;  %vm67_vm4 = vcmp.eq.s32.totalorder %v56_v16, %v62_v20 }
  0xae   :  { %v1924_v24 = vsel %vm67_vm4, 1.0, %v2453_v1  ;;  %vm83_vm6 = vcmp.eq.s32.totalorder %v56_v16, %v79_v21 }
  0xaf   :  { %v75_v25 = vpack.c.bf16 %v1924_v24, %v1923_v22  ;;  %v1926_v27 = vsel %vm83_vm6, 1.0, %v2453_v1 }
  0xb0   :  { %v82_v26 = vpop.permute.xlu0 %81 }
  0xb1   :  { %vm84_vm7 = vcmp.eq.s32.totalorder %v56_v16, %v82_v26  ;;  %2098 = vmatprep.mubr.msk.bf16.mxu0 %vm121_vm5, %v75_v25 }
  0xb2   :  { %v1927_v28 = vsel %vm84_vm7, 1.0, %v2453_v1  ;;  %2099 = vmatmul.mubr.msk.bf16.vlgmr.msra.gmra.mrb[0].mxu0 %vm121_vm5, %v76_v23 }
  0xb3   :  { %v89_v29 = vpack.c.bf16 %v1927_v28, %v1926_v27 }
  0xb5   :  { %2109 = vmatmul.mubr.msk.bf16.vlgmr.msra.gmra.mrb[0].mxu1 %vm206_vm8, %v89_v29 }
  0xb6   :  { %2113 = vmatpush3.bf16.msra.mxu1 %v2284_v30 }
  0xb7   :  { %2114 = vmatprep.subr.bf16.mxu1 %v2285_v31 }
  0xba   :  { %2115 = vmatpush3.bf16.msra.mxu1 %v2285_v31  ;;  %v2286_v31 = vld [vmem:[#allocation2 + $0x44] sm:$0xff]  }
 0x185   :  { %v2100_v33 = vpop.f32.mrb[0].mxu0 }
 0x186   :  { %v166_v34 = vpop.f32.mrb[1].mxu0  ;;  %v2541_v38 = vadd.f32 %v2100_v33, %v99_v32 }
 0x187   :  { %v2101_v37 = vpop.f32.mrb[2].mxu0  ;;  %v2545_v41 = vadd.f32 %v166_v34, %v97_v35 }
 0x188   :  { %v169_v39 = vpop.f32.mrb[3].mxu0  ;;  %v2543_v40 = vpop.f32.mrb[0].mxu1  ;;  %v269_v47 = vpack.c.bf16 %v2541_v38, %v2541_v38 }
 0x189   :  { %v2547_v42 = vadd.f32 %v169_v39, %v98_v36  ;;  %v2110_v43 = vpop.f32.mrb[1].mxu1 }
 0x18a   :  { %v2549_v44 = vpop.f32.mrb[2].mxu1 }
 0x18b   :  { %v268_v45 = vpack.c.bf16 %v2547_v42, %v2545_v41  ;;  %v2111_v46 = vpop.f32.mrb[3].mxu1 }
 0x18d   :  { %2116 = vmatprep.mubr.msk.bf16.mxu1 %vm286_vm9, %v268_v45 }
 0x18e   :  { %2117 = vmatmul.mubr.msk.bf16.vlgmr.msra.gmra.mrb[4].mxu1 %vm286_vm9, %v269_v47  ;;  %v2287_v47 = vld [vmem:[#allocation2 + $0x4c] sm:$0xff]  }
 0x261   :  { %v2118_v49 = vpop.f32.mrb[4].mxu1 }
 0x262   :  { %v336_v50 = vadd.f32 %v2118_v49, %v1938_v48  ;;  %v327_v51 = vpop.f32.mrb[5].mxu1 }
 0x263   :  { %v2119_v52 = vpop.f32.mrb[6].mxu1  ;;  %v328_v55 = vadd.f32 %v1938_v48, %v327_v51 }
 0x264   :  { %v342_v53 = vpack.c.bf16 %v336_v50, %v336_v50  ;;  %v330_v54 = vpop.f32.mrb[7].mxu1 }
 0x265   :  { %v331_v56 = vadd.f32 %v1938_v48, %v330_v54  ;;  %v1947_v54 = vld [vmem:[#allocation5 + $0x50] ss:$0 sm:$0xff] }
 0x266   :  { %347 = vrot.lane.b32.xlu0 %v342_v53, %s2455_s0 }
 0x267   :  { %v341_v57 = vpack.c.bf16 %v331_v56, %v328_v55 }
 0x269   :  { %345 = vrot.lane.b32.xlu1 %v341_v57, %s2455_s0  ;;  %2124 = vmatprep.mubr.msk.bf16.mxu0 %vm286_vm9, %v341_v57 }
 0x2d8   :  { %v348_v60 = vpop.permute.xlu0 %347 }
 0x2d9   :  { %v359_v61 = vsel %vm286_vm9, %v348_v60, 0 }
 0x2db   :  { %v346_v58 = vpop.permute.xlu1 %345 }
 0x2dc   :  { %v356_v59 = vsel %vm286_vm9, %v346_v58, 0  ;;  %2261 = vmatprep.subr.msk.bf16.mxu0 %vm286_vm9, %v346_v58 }
 0x2dd   :  { %2121 = vmatpush3.bf16.xpose.msra.mxu0 %v356_v59 }
 0x2de   :  { %2262 = vmatprep.subr.msk.bf16.mxu0 %vm286_vm9, %v348_v60 }
 0x2e5   :  { %2123 = vmatpush3.bf16.xpose.msra.mxu0 %v359_v61 }
 0x2ec   :  { %2125 = vmatmul.mubr.msk.bf16.vlgmr.msra.gmra.mrb[4].mxu0 %vm286_vm9, %v342_v53 }
 0x3bf   :  { %v2126_v63 = vpop.f32.mrb[4].mxu0 }
 0x3c0   :  { %v395_v0 = vpop.f32.mrb[5].mxu0  ;;  %v404_v9 = vadd.f32 %v2126_v63, %v253_v5 }
 0x3c1   :  { %v396_v3 = vadd.f32 %v395_v0, %v251_v62  ;;  %v2127_v4 = vpop.f32.mrb[6].mxu0 }
 0x3c2   :  { %v398_v6 = vpop.f32.mrb[7].mxu0  ;;  %v417_v11 = vsel %vm416_vm11, %v404_v9, -inf }
 0x3c3   :  { %v399_v7 = vadd.f32 %v398_v6, %v252_v2  ;;  %v410_v8 = vsel %vm409_vm10, %v396_v3, -inf }
 0x3c4   :  { %411 = vmax.xlane.f32.xlu1 %v410_v8 }
 0x3c5   :  { %v413_v10 = vsel %vm409_vm10, %v399_v7, -inf }
 0x3c6   :  { %414 = vmax.xlane.f32.xlu0 %v413_v10 }
 0x3ca   :  { %418 = vmax.xlane.f32.xlu0 %v417_v11 }
 0x451   :  { %v412_v12 = vpop.xlane.xlu1 %411 }
 0x452   :  { %v420_v15 = vsub.f32 %v396_v3, %v412_v12 }
 0x453   :  { %v415_v13 = vpop.xlane.xlu0 %414 }
 0x454   :  { %v421_v14 = vsub.f32 %v399_v7, %v415_v13  ;;  %v423_v19 = vmul.f32 1.442695, %v420_v15 }
 0x456   :  { %v425_v16 = vmul.f32 1.442695, %v421_v14 }
 0x457   :  { %v419_v17 = vpop.xlane.xlu0 %418 }
 0x458   :  { %2312 = vpow2.f32 %v425_v16  ;;  %v422_v18 = vsub.f32 %v404_v9, %v419_v17  ;;  %v2288_v17 = vld [vmem:[#allocation2 + $0x54] sm:$0xff]  }
 0x459   :  { %2144 = vmatprep.subr.bf16.mxu0 %v2288_v17 }
 0x45a   :  { %v427_v20 = vmul.f32 1.442695, %v422_v18  ;;  %v2289_v18 = vld [vmem:[#allocation2 + $0x5c] sm:$0xff]   ;;  %2145 = vmatpush3.bf16.msra.mxu0 %v2288_v17 }
 0x45b   :  { %2146 = vmatprep.subr.bf16.mxu0 %v2289_v18 }
 0x45c   :  { %2314 = vpow2.f32 %v427_v20  ;;  %v2293_v20 = vld [vmem:[#allocation2 + $0x6c] sm:$0xff]  }
 0x45d   :  { %2316 = vpow2.f32 %v423_v19  ;;  %v2292_v19 = vld [vmem:[#allocation2 + $0x64] sm:$0xff]  }
 0x45e   :  { %2147 = vmatpush3.bf16.msra.mxu0 %v2289_v18 }
 0x45f   :  { %2164 = vmatprep.subr.bf16.mxu0 %v2453_v1 }
 0x462   :  { %v2313_v21 = vpop.eup %2312 }
 0x463   :  { %v432_v22 = vsel %vm409_vm10, %v2313_v21, 0.0 }
 0x464   :  { %433 = vadd.xlane.f32.xlu0 %v432_v22 }
 0x466   :  { %v2315_v23 = vpop.eup %2314 }
 0x467   :  { %v435_v24 = vsel %vm416_vm11, %v2315_v23, 0.0  ;;  %v2317_v25 = vpop.eup %2316 }
 0x468   :  { %436 = vadd.xlane.f32.xlu1 %v435_v24  ;;  %v429_v26 = vsel %vm409_vm10, %v2317_v25, 0.0 }
 0x46c   :  { %430 = vadd.xlane.f32.xlu1 %v429_v26 }
 0x47a   :  { %446 = vrot.lane.b32.xlu0 %v341_v57, %s2447_s28 }
 0x47d   :  { %448 = vrot.lane.b32.xlu1 %v342_v53, %s2447_s28 }
 0x4f1   :  { %v434_v27 = vpop.xlane.xlu0 %433 }
 0x4f5   :  { %v447_v28 = vpop.permute.xlu0 %446  ;;  %v437_v29 = vpop.xlane.xlu1 %436 }
 0x4f6   :  { %2128 = vmatprep.subr.bf16.mxu1 %v447_v28  ;;  %2318 = vrcp.f32 %v437_v29 }
 0x4f7   :  { %2129 = vmatpush3.bf16.msra.mxu1 %v447_v28  ;;  %2320 = vrcp.f32 %v434_v27 }
 0x4f9   :  { %v431_v30 = vpop.xlane.xlu1 %430 }
 0x4fa   :  { %2322 = vrcp.f32 %v431_v30 }
 0x4fd   :  { %v449_v32 = vpop.permute.xlu1 %448 }
 0x4fe   :  { %v459_v33 = vsel %vm457_vm12, %v449_v32, 0  ;;  %2263 = vmatprep.subr.msk.bf16.mxu1 %vm457_vm12, %v449_v32 }
 0x4ff   :  { %2131 = vmatpush3.bf16.msra.mxu1 %v459_v33 }
 0x500   :  { %2136 = vmatprep.subr.bf16.mxu1 %v2286_v31  ;;  %v2319_v34 = vpop.eup %2318 }
 0x501   :  { %v2321_v35 = vpop.eup %2320  ;;  %v443_v37 = vmul.f32 %v2319_v34, %v2315_v23 }
 0x502   :  { %v441_v43 = vmul.f32 %v2321_v35, %v2313_v21 }
 0x503   :  { %v445_v46 = vpack.c.bf16 %v443_v37, %v443_v37 }
 0x504   :  { %v2323_v36 = vpop.eup %2322 }
 0x505   :  { %v439_v39 = vmul.f32 %v2323_v36, %v2317_v25  ;;  %v1953_v36 = vld [vmem:[#allocation5 + $0x70] ss:$0 sm:$0xff] }
 0x507   :  { %v444_v45 = vpack.c.bf16 %v441_v43, %v439_v39 }
 0x509   :  { %2132 = vmatprep.mubr.msk.bf16.mxu1 %vm409_vm10, %v444_v45 }
 0x50a   :  { %2133 = vmatmul.mubr.msk.bf16.vlgmr.msra.gmra.mrb[8].mxu1 %vm409_vm10, %v445_v46 }
 0x50b   :  { %2137 = vmatpush3.bf16.msra.mxu1 %v2286_v31  ;;  %v1952_v31 = vld [vmem:[#allocation5 + $0x68] ss:$0 sm:$0xff] }
 0x50c   :  { %2138 = vmatprep.subr.bf16.mxu1 %v2287_v47 }
 0x50f   :  { %2139 = vmatpush3.bf16.msra.mxu1 %v2287_v47 }
 0x510   :  { %2152 = vmatprep.subr.bf16.mxu1 %v2292_v19 }
 0x5dd   :  { %v2134_v48 = vpop.f32.mrb[8].mxu1 }
 0x5de   :  { %v495_v49 = vpop.f32.mrb[9].mxu1  ;;  %v510_v53 = vpack.c.bf16 %v2134_v48, %v2134_v48 }
 0x5df   :  { %v2135_v50 = vpop.f32.mrb[10].mxu1 }
 0x5e0   :  { %v498_v51 = vpop.f32.mrb[11].mxu1  ;;  %v2290_v50 = vld [vmem:[#allocation2 + $0x84] sm:$0xff]  }
 0x5e1   :  { %v509_v52 = vpack.c.bf16 %v498_v51, %v495_v49 }
 0x5e3   :  { %2140 = vmatprep.mubr.msk.bf16.mxu1 %vm286_vm9, %v509_v52  ;;  %v187_v52 = vld [vmem:[#allocation5 + $0x20] sm:$0xff] }
 0x5e4   :  { %2141 = vmatmul.mubr.msk.bf16.vlgmr.msra.gmra.mrb[12].mxu1 %vm286_vm9, %v510_v53  ;;  %v186_v53 = vld [vmem:[#allocation5 + $0x18] sm:$0xff] }
 0x5e5   :  { %2153 = vmatpush3.bf16.msra.mxu1 %v2292_v19 }
 0x5e6   :  { %2154 = vmatprep.subr.bf16.mxu1 %v2293_v20 }
 0x5e9   :  { %2155 = vmatpush3.bf16.msra.mxu1 %v2293_v20 }
 0x6b7   :  { %v2142_v55 = vpop.f32.mrb[12].mxu1 }
 0x6b8   :  { %v567_v56 = vpop.f32.mrb[13].mxu1  ;;  %v576_v60 = vadd.f32 %v2142_v55, %v1947_v54  ;;  %v2613_v55 = vadd.f32 %v2549_v44, %v187_v52  ;;  %v2295_v44 = vld [vmem:[#allocation2 + $0x7c] sm:$0xff]  }
 0x6b9   :  { %v568_v57 = vadd.f32 %v1947_v54, %v567_v56  ;;  %v2143_v58 = vpop.f32.mrb[14].mxu1  ;;  %v2617_v56 = vadd.f32 %v2543_v40, %v186_v53  ;;  %v1954_v40 = vld [vmem:[#allocation5 + $0x58] ss:$0 sm:$0xff] }
 0x6ba   :  { %v570_v59 = vpop.f32.mrb[15].mxu1  ;;  %v583_v3 = vadd.f32 %v576_v60, %v2541_v38  ;;  %v2294_v58 = vld [vmem:[#allocation2 + $0x74] sm:$0xff]  }
 0x6bb   :  { %v571_v61 = vadd.f32 %v1947_v54, %v570_v59  ;;  %v581_v62 = vadd.f32 %v568_v57, %v2545_v41  ;;  %v2291_v54 = vld [vmem:[#allocation2 + $0x8c] sm:$0xff]   ;;  %v938_v57 = vpack.c.bf16 %v2613_v55, %v2617_v56  ;;  %2156 = vmatprep.subr.bf16.mxu1 %v2294_v58 }
 0x6bc   :  { %v593_v4 = vsel %vm592_vm13, %v583_v3, 0.0  ;;  %2157 = vmatpush3.bf16.msra.mxu1 %v2294_v58 }
 0x6bd   :  { %v586_v63 = vsel %vm286_vm9, %v581_v62, 0.0  ;;  %v582_v0 = vadd.f32 %v571_v61, %v2547_v42  ;;  %2158 = vmatprep.subr.bf16.mxu1 %v2295_v44 }
 0x6be   :  { %587 = vadd.xlane.f32.xlu1 %v586_v63 }
 0x6bf   :  { %v589_v2 = vsel %vm286_vm9, %v582_v0, 0.0 }
 0x6c0   :  { %590 = vadd.xlane.f32.xlu0 %v589_v2  ;;  %2159 = vmatpush3.bf16.msra.mxu1 %v2295_v44 }
 0x6c1   :  { %2178 = vmatprep.subr.bf16.mxu1 %v2453_v1 }
 0x6c4   :  { %594 = vadd.xlane.f32.xlu0 %v593_v4 }
 0x74b   :  { %v588_v5 = vpop.xlane.xlu1 %587 }
 0x74c   :  { %v597_v6 = vmul.f32 0.03125, %v588_v5 }
 0x74d   :  { %v591_v7 = vpop.xlane.xlu0 %590 }
 0x74e   :  { %v600_v8 = vsub.f32 %v581_v62, %v597_v6  ;;  %v598_v9 = vmul.f32 0.03125, %v591_v7  ;;  %v1970_v7 = vld [vmem:[#allocation5 + $0x98] ss:$0 sm:$0xff] }
 0x750   :  { %v601_v41 = vsub.f32 %v582_v0, %v598_v9  ;;  %v603_v10 = vmul.f32 %v600_v8, %v600_v8 }
 0x751   :  { %v595_v11 = vpop.xlane.xlu0 %594 }
 0x752   :  { %v599_v12 = vmul.f32 0.03125, %v595_v11  ;;  %v606_v42 = vsel %vm286_vm9, %v603_v10, 0.0  ;;  %v604_v13 = vmul.f32 %v601_v41, %v601_v41 }
 0x753   :  { %607 = vadd.xlane.f32.xlu1 %v606_v42 }
 0x754   :  { %v602_v14 = vsub.f32 %v583_v3, %v599_v12  ;;  %v609_v38 = vsel %vm286_vm9, %v604_v13, 0.0 }
 0x755   :  { %610 = vadd.xlane.f32.xlu0 %v609_v38 }
 0x756   :  { %v605_v15 = vmul.f32 %v602_v14, %v602_v14 }
 0x758   :  { %v612_v16 = vsel %vm592_vm13, %v605_v15, 0.0  ;;  %v1959_v15 = vld [vmem:[#allocation5 + $0x60] ss:$0 sm:$0xff] }
 0x759   :  { %613 = vadd.xlane.f32.xlu1 %v612_v16 }
 0x7e0   :  { %v608_v21 = vpop.xlane.xlu1 %607 }
 0x7e1   :  { %v615_v22 = vmul.f32 0.03125, %v608_v21 }
 0x7e2   :  { %v611_v23 = vpop.xlane.xlu0 %610 }
 0x7e3   :  { %v618_v24 = vadd.f32 1e-05, %v615_v22  ;;  %v616_v25 = vmul.f32 0.03125, %v611_v23 }
 0x7e5   :  { %2324 = vrsqrt.f32 %v618_v24  ;;  %v619_v26 = vadd.f32 1e-05, %v616_v25 }
 0x7e6   :  { %v614_v27 = vpop.xlane.xlu1 %613 }
 0x7e7   :  { %2326 = vrsqrt.f32 %v619_v26  ;;  %v617_v28 = vmul.f32 0.03125, %v614_v27  ;;  %v254_v27 = vld [vmem:[#allocation5 + $0x28] sm:$0xff] }
 0x7e9   :  { %v620_v29 = vadd.f32 1e-05, %v617_v28 }
 0x7eb   :  { %2328 = vrsqrt.f32 %v620_v29  ;;  %v255_v29 = vld [vmem:[#allocation5 + $0x30] sm:$0xff] }
 0x7ef   :  { %v2325_v30 = vpop.eup %2324 }
 0x7f0   :  { %v624_v32 = vmul.f32 %v2325_v30, %v600_v8 }
 0x7f1   :  { %v2327_v33 = vpop.eup %2326 }
 0x7f2   :  { %v625_v34 = vmul.f32 %v2327_v33, %v601_v41  ;;  %v631_v35 = vmul.f32 %v1952_v31, %v624_v32 }
 0x7f4   :  { %v632_v37 = vmul.f32 %v1952_v31, %v625_v34  ;;  %v2598_v45 = vadd.f32 %v1953_v36, %v631_v35 }
 0x7f5   :  { %v2329_v39 = vpop.eup %2328 }
 0x7f6   :  { %v626_v43 = vmul.f32 %v2329_v39, %v602_v14  ;;  %v2600_v46 = vadd.f32 %v1953_v36, %v632_v37 }
 0x7f8   :  { %v655_v47 = vpack.c.bf16 %v2600_v46, %v2598_v45  ;;  %v633_v48 = vmul.f32 %v1952_v31, %v626_v43 }
 0x7fa   :  { %2148 = vmatprep.mubr.msk.bf16.mxu0 %vm286_vm9, %v655_v47  ;;  %v2605_v49 = vadd.f32 %v1953_v36, %v633_v48 }
 0x7fc   :  { %v656_v51 = vpack.c.bf16 %v2605_v49, %v2605_v49 }
 0x7fe   :  { %2149 = vmatmul.mubr.msk.bf16.vlgmr.msra.gmra.mrb[8].mxu0 %vm286_vm9, %v656_v51 }
 0x7ff   :  { %2165 = vmatpush3.bf16.msra.mxu0 %v2290_v50  ;;  %2168 = vmatprep.mubr.msk.bf16.mxu0 %vm2454_vm1, %v2453_v1 }
 0x800   :  { %2166 = vmatprep.subr.bf16.mxu0 %v2453_v1 }
 0x803   :  { %2167 = vmatpush3.bf16.msra.mxu0 %v2291_v54 }
 0x804   :  { %2172 = vmatprep.subr.bf16.mxu0 %v2453_v1 }
 0x806   :  { %2169 = vmatmul.mubr.msk.bf16.vlgmr.msra.gmra.mrb[12].mxu0 %vm286_vm9, %v938_v57 }
 0x807   :  { %2174 = vmatprep.mubr.msk.bf16.mxu0 %vm2454_vm1, %v2453_v1 }
 0x8d1   :  { %v2150_v59 = vpop.f32.mrb[8].mxu0 }
 0x8d2   :  { %v722_v60 = vadd.f32 %v2150_v59, %v1954_v40  ;;  %v713_v61 = vpop.f32.mrb[9].mxu0 }
 0x8d3   :  { %v714_v62 = vadd.f32 %v1954_v40, %v713_v61  ;;  %v2151_v63 = vpop.f32.mrb[10].mxu0 }
 0x8d4   :  { %v716_v0 = vpop.f32.mrb[11].mxu0  ;;  %v729_v3 = vmax.f32 %v722_v60, 0.0 }
 0x8d5   :  { %v717_v2 = vadd.f32 %v1954_v40, %v716_v0  ;;  %v727_v4 = vmax.f32 %v714_v62, 0.0 }
 0x8d6   :  { %v731_v9 = vpack.c.bf16 %v729_v3, %v729_v3 }
 0x8d7   :  { %v728_v5 = vmax.f32 %v717_v2, 0.0 }
 0x8d9   :  { %v730_v6 = vpack.c.bf16 %v728_v5, %v727_v4  ;;  %v992_v8 = vpop.f32.mrb[12].mxu0 }
 0x8da   :  { %v2170_v41 = vpop.f32.mrb[13].mxu0  ;;  %v993_v11 = vadd.f32 %v1970_v7, %v992_v8 }
 0x8db   :  { %2160 = vmatprep.mubr.msk.bf16.mxu1 %vm760_vm14, %v730_v6  ;;  %v995_v10 = vpop.f32.mrb[14].mxu0 }
 0x8dc   :  { %v996_v12 = vadd.f32 %v1970_v7, %v995_v10  ;;  %2161 = vmatmul.mubr.msk.bf16.vlgmr.msra.gmra.mrb[16].mxu1 %vm760_vm14, %v731_v9  ;;  %v2171_v42 = vpop.f32.mrb[15].mxu0 }
 0x8dd   :  { %2180 = vmatprep.mubr.msk.bf16.mxu1 %vm2454_vm1, %v2453_v1 }
 0x8de   :  { %v999_v13 = vpack.c.bf16 %v996_v12, %v993_v11 }
 0x8e0   :  { %1001 = vrot.lane.b32.xlu0 %v999_v13, %s2455_s0 }
 0x952   :  { %v1002_v14 = vpop.permute.xlu0 %1001 }
 0x953   :  { %v1007_v38 = vsel %vm286_vm9, %v1002_v14, 0 }
 0x954   :  { %2173 = vmatpush3.bf16.xpose.msra.mxu0 %v1007_v38 }
 0x955   :  { %2184 = vmatprep.subr.bf16.mxu0 %v2453_v1 }
 0x95b   :  { %2175 = vmatmul.mubr.msk.bf16.vlgmr.msra.gmra.mrb[16].mxu0 %vm286_vm9, %v999_v13 }
 0x95c   :  { %2188 = vmatprep.mubr.msk.bf16.mxu0 %vm2454_vm1, %v2453_v1 }
 0x9af   :  { %v2162_v16 = vpop.f32.mrb[16].mxu1 }
 0x9b0   :  { %v801_v17 = vpop.f32.mrb[17].mxu1  ;;  %v810_v18 = vadd.f32 %v2162_v16, %v1959_v15 }
 0x9b1   :  { %v802_v19 = vadd.f32 %v1959_v15, %v801_v17  ;;  %v2163_v20 = vpop.f32.mrb[18].mxu1  ;;  %v1967_v17 = vld [vmem:[#allocation5 + $0x80] ss:$0 sm:$0xff] }
 0x9b2   :  { %v804_v21 = vpop.f32.mrb[19].mxu1  ;;  %v2639_v25 = vadd.f32 %v810_v18, %v2605_v49 }
 0x9b3   :  { %v805_v22 = vadd.f32 %v1959_v15, %v804_v21  ;;  %v815_v23 = vadd.f32 %v802_v19, %v2598_v45  ;;  %v2296_v21 = vld [vmem:[#allocation2 + $0x94] sm:$0xff]  }
 0x9b4   :  { %v826_v26 = vsel %vm592_vm13, %v2639_v25, 0.0  ;;  %2185 = vmatpush3.bf16.msra.mxu0 %v2296_v21 }
 0x9b5   :  { %v820_v24 = vsel %vm286_vm9, %v815_v23, 0.0  ;;  %v816_v40 = vadd.f32 %v805_v22, %v2600_v46  ;;  %2186 = vmatprep.subr.bf16.mxu0 %v2453_v1  ;;  %v2297_v22 = vld [vmem:[#allocation2 + $0x9c] sm:$0xff]  }
 0x9b6   :  { %821 = vadd.xlane.f32.xlu0 %v820_v24 }
 0x9b7   :  { %v823_v59 = vsel %vm286_vm9, %v816_v40, 0.0 }
 0x9b8   :  { %2187 = vmatpush3.bf16.msra.mxu0 %v2297_v22 }
 0x9ba   :  { %827 = vadd.xlane.f32.xlu0 %v826_v26 }
 0xa2e   :  { %v1043_v28 = vpop.f32.mrb[16].mxu0 }
 0xa2f   :  { %v1044_v30 = vadd.f32 %v1043_v28, %v254_v27  ;;  %v2176_v31 = vpop.f32.mrb[17].mxu0 }
 0xa30   :  { %v1046_v32 = vpop.f32.mrb[18].mxu0 }
 0xa31   :  { %v1047_v33 = vadd.f32 %v1046_v32, %v255_v29  ;;  %v2177_v34 = vpop.f32.mrb[19].mxu0  ;;  %v1051_v35 = vsel %vm1050_vm15, %v1044_v30, -inf }
 0xa32   :  { %1052 = vmax.xlane.f32.xlu1 %v1051_v35 }
 0xa33   :  { %v1054_v36 = vsel %vm1050_vm15, %v1047_v33, -inf }
 0xa36   :  { %1055 = vmax.xlane.f32.xlu1 %v1054_v36 }
 0xa43   :  { %v822_v37 = vpop.xlane.xlu0 %821 }
 0xa44   :  { %v829_v39 = vmul.f32 0.03125, %v822_v37 }
 0xa46   :  { %v832_v43 = vsub.f32 %v815_v23, %v829_v39 }
 0xa47   :  { %v828_v46 = vpop.xlane.xlu0 %827 }
 0xa48   :  { %v835_v45 = vmul.f32 %v832_v43, %v832_v43  ;;  %v831_v8 = vmul.f32 0.03125, %v828_v46 }
 0xa4a   :  { %v838_v47 = vsel %vm286_vm9, %v835_v45, 0.0  ;;  %v834_v11 = vsub.f32 %v2639_v25, %v831_v8 }
 0xa4b   :  { %839 = vadd.xlane.f32.xlu0 %v838_v47 }
 0xa4c   :  { %v837_v15 = vmul.f32 %v834_v11, %v834_v11 }
 0xa4e   :  { %v844_v18 = vsel %vm592_vm13, %v837_v15, 0.0 }
 0xabf   :  { %v1053_v48 = vpop.xlane.xlu1 %1052 }
 0xac0   :  { %v1057_v49 = vsub.f32 %v1044_v30, %v1053_v48 }
 0xac2   :  { %v1059_v50 = vmul.f32 1.442695, %v1057_v49 }
 0xac3   :  { %v1056_v51 = vpop.xlane.xlu1 %1055 }
 0xac4   :  { %2330 = vpow2.f32 %v1059_v50  ;;  %v1058_v52 = vsub.f32 %v1047_v33, %v1056_v51 }
 0xac6   :  { %v1061_v53 = vmul.f32 1.442695, %v1058_v52 }
 0xac8   :  { %2332 = vpow2.f32 %v1061_v53 }
 0xace   :  { %v2331_v54 = vpop.eup %2330 }
 0xacf   :  { %v1063_v57 = vsel %vm1050_vm15, %v2331_v54, 0.0 }
 0xad0   :  { %1064 = vadd.xlane.f32.xlu1 %v1063_v57 }
 0xad2   :  { %v2333_v58 = vpop.eup %2332 }
 0xad3   :  { %v1066_v44 = vsel %vm1050_vm15, %v2333_v58, 0.0 }
 0xad4   :  { %1067 = vadd.xlane.f32.xlu1 %v1066_v44 }
 0xad8   :  { %v840_v5 = vpop.xlane.xlu0 %839 }
 0xad9   :  { %v847_v6 = vmul.f32 0.03125, %v840_v5 }
 0xadb   :  { %v850_v7 = vadd.f32 1e-05, %v847_v6 }
 0xae5   :  { %1074 = vrot.lane.b32.xlu1 %v999_v13, %s2447_s28  ;;  %v1966_v13 = vld [vmem:[#allocation5 + $0x78] ss:$0 sm:$0xff]  ;;  %s1910_s28 = sshll.u32 %s2456_s2, 4  ;;  %s1911_s28 = int_to_ptr.vmem [resolvable:$true] %s1910_s28 }
 0xae6   :  { %s2418_s10 = scalar_lea.vmem %s1911_s28, 256  ;;  %p2423_p3 = scmp.lt.s32.totalorder %s1911_s28, %s1911_s28 }
 0xae7   :  { %p2419_p2 = scmp.ne.s32.totalorder %s1911_s28, %s2418_s10  ;;  %p2424_p4 = scmp.lt.s32.totalorder %s2418_s10, %s2418_s10 }
 0xae9   :  { %p2425_p5 = por %p2424_p4, %p2423_p3 }
 0xaeb   :  { %p2426_p6 = pnand %p2425_p5, %p2419_p2 }
 0xb09   :  { %824 = vadd.xlane.f32.xlu1 %v823_v59 }
 0xb5d   :  { %v1065_v60 = vpop.xlane.xlu1 %1064 }
 0xb5e   :  { %2334 = vrcp.f32 %v1065_v60 }
 0xb61   :  { %v1068_v61 = vpop.xlane.xlu1 %1067 }
 0xb62   :  { %2336 = vrcp.f32 %v1068_v61 }
 0xb63   :  { %2338 = vrsqrt.f32 %v850_v7 }
 0xb65   :  { %v1075_v62 = vpop.permute.xlu1 %1074 }
 0xb66   :  { %2179 = vmatpush3.bf16.msra.mxu1 %v1075_v62 }
 0xb67   :  { %2192 = vmatprep.subr.bf16.mxu1 %v2453_v1 }
 0xb68   :  { %v2335_v63 = vpop.eup %2334 }
 0xb69   :  { %v1070_v2 = vmul.f32 %v2335_v63, %v2331_v54  ;;  %v1976_v54 = vld [vmem:[#allocation5 + $0xa0] ss:$0 sm:$0xff] }
 0xb6c   :  { %v2337_v0 = vpop.eup %2336 }
 0xb6d   :  { %v1072_v3 = vmul.f32 %v2337_v0, %v2333_v58  ;;  %v2339_v9 = vpop.eup %2338 }
 0xb6e   :  { %v856_v42 = vmul.f32 %v2339_v9, %v832_v43 }
 0xb6f   :  { %v1073_v4 = vpack.c.bf16 %v1072_v3, %v1070_v2 }
 0xb70   :  { %v863_v16 = vmul.f32 %v1966_v13, %v856_v42 }
 0xb71   :  { %2181 = vmatmul.mubr.msk.bf16.vlgmr.msra.gmra.mrb[20].mxu1 %vm1050_vm15, %v1073_v4 }
 0xb72   :  { %2196 = vmatprep.mubr.msk.bf16.mxu1 %vm2454_vm1, %v2453_v1  ;;  %v870_v19 = vadd.f32 %v1967_v17, %v863_v16 }
 0xb74   :  { %v875_v20 = vsel %vm286_vm9, %v870_v19, 0.0 }
 0xb96   :  { %v825_v41 = vpop.xlane.xlu1 %824 }
 0xb97   :  { %v830_v10 = vmul.f32 0.03125, %v825_v41 }
 0xb99   :  { %v833_v12 = vsub.f32 %v816_v40, %v830_v10  ;;  %v2298_v10 = vld [vmem:[#allocation2 + $0xb4] sm:$0xff]  }
 0xb9a   :  { %2200 = vmatprep.subr.bf16.mxu0 %v2298_v10 }
 0xb9b   :  { %v836_v14 = vmul.f32 %v833_v12, %v833_v12 }
 0xb9d   :  { %v841_v38 = vsel %vm286_vm9, %v836_v14, 0.0 }
 0xb9e   :  { %842 = vadd.xlane.f32.xlu0 %v841_v38 }
 0xba2   :  { %845 = vadd.xlane.f32.xlu0 %v844_v18 }
 0xba6   :  { %876 = vadd.xlane.f32.xlu0 %v875_v20 }
 0xc2b   :  { %v843_v23 = vpop.xlane.xlu0 %842 }
 0xc2c   :  { %v848_v24 = vmul.f32 0.03125, %v843_v23 }
 0xc2e   :  { %v851_v25 = vadd.f32 1e-05, %v848_v24 }
 0xc2f   :  { %v846_v26 = vpop.xlane.xlu0 %845 }
 0xc30   :  { %2340 = vrsqrt.f32 %v851_v25  ;;  %v849_v27 = vmul.f32 0.03125, %v846_v26 }
 0xc32   :  { %v852_v28 = vadd.f32 1e-05, %v849_v27 }
 0xc33   :  { %v877_v50 = vpop.xlane.xlu0 %876 }
 0xc34   :  { %2342 = vrsqrt.f32 %v852_v28  ;;  %v884_v52 = vmul.f32 0.03125, %v877_v50  ;;  %v2300_v50 = vld [vmem:[#allocation2 + $0xa4] sm:$0xff]  }
 0xc35   :  { %2193 = vmatpush3.bf16.msra.mxu1 %v2300_v50 }
 0xc36   :  { %v887_v44 = vsub.f32 %v870_v19, %v884_v52  ;;  %2194 = vmatprep.subr.bf16.mxu1 %v2453_v1 }
 0xc38   :  { %v890_v5 = vmul.f32 %v887_v44, %v887_v44 }
 0xc3a   :  { %v2341_v29 = vpop.eup %2340  ;;  %v893_v8 = vsel %vm286_vm9, %v890_v5, 0.0 }
 0xc3b   :  { %v857_v30 = vmul.f32 %v2341_v29, %v833_v12  ;;  %v1968_v29 = vld [vmem:[#allocation5 + $0x88] ss:$0 sm:$0xff] }
 0xc3d   :  { %v864_v31 = vmul.f32 %v1966_v13, %v857_v30 }
 0xc3e   :  { %v2343_v32 = vpop.eup %2342 }
 0xc3f   :  { %v871_v33 = vadd.f32 %v1967_v17, %v864_v31  ;;  %v858_v34 = vmul.f32 %v2343_v32, %v834_v11  ;;  %v2299_v11 = vld [vmem:[#allocation2 + $0xbc] sm:$0xff]  }
 0xc41   :  { %v878_v35 = vsel %vm286_vm9, %v871_v33, 0.0  ;;  %v865_v36 = vmul.f32 %v1966_v13, %v858_v34 }
 0xc42   :  { %879 = vadd.xlane.f32.xlu1 %v878_v35  ;;  %v1969_v35 = vld [vmem:[#allocation5 + $0x90] ss:$0 sm:$0xff] }
 0xc43   :  { %v872_v37 = vadd.f32 %v1967_v17, %v865_v36 }
 0xc44   :  { %v1114_v39 = vpop.f32.mrb[20].mxu1 }
 0xc45   :  { %v2182_v43 = vpop.f32.mrb[21].mxu1  ;;  %v881_v45 = vsel %vm592_vm13, %v872_v37, 0.0 }
 0xc46   :  { %v1117_v47 = vpop.f32.mrb[22].mxu1  ;;  %882 = vadd.xlane.f32.xlu0 %v881_v45 }
 0xc47   :  { %v1121_v48 = vpack.c.bf16 %v1117_v47, %v1114_v39  ;;  %v2183_v49 = vpop.f32.mrb[23].mxu1 }
 0xc49   :  { %2189 = vmatmul.mubr.msk.bf16.vlgmr.msra.gmra.mrb[20].mxu0 %vm286_vm9, %v1121_v48 }
 0xc4a   :  { %2201 = vmatpush3.bf16.msra.mxu0 %v2298_v10 }
 0xc4b   :  { %2202 = vmatprep.subr.bf16.mxu0 %v2299_v11 }
 0xc4e   :  { %2203 = vmatpush3.bf16.msra.mxu0 %v2299_v11 }
 0xc4f   :  { %2216 = vmatprep.subr.bf16.mxu0 %v2453_v1 }
 0xccf   :  { %v880_v51 = vpop.xlane.xlu1 %879 }
 0xcd0   :  { %v885_v57 = vmul.f32 0.03125, %v880_v51  ;;  %v2301_v51 = vld [vmem:[#allocation2 + $0xac] sm:$0xff]  }
 0xcd1   :  { %2195 = vmatpush3.bf16.msra.mxu1 %v2301_v51 }
 0xcd2   :  { %v888_v62 = vsub.f32 %v871_v33, %v885_v57  ;;  %2208 = vmatprep.subr.bf16.mxu1 %v2453_v1 }
 0xcd3   :  { %v883_v53 = vpop.xlane.xlu0 %882 }
 0xcd4   :  { %v886_v40 = vmul.f32 0.03125, %v883_v53  ;;  %v891_v7 = vmul.f32 %v888_v62, %v888_v62 }
 0xcd6   :  { %v889_v3 = vsub.f32 %v872_v37, %v886_v40  ;;  %v896_v41 = vsel %vm286_vm9, %v891_v7, 0.0 }
 0xcd8   :  { %v892_v9 = vmul.f32 %v889_v3, %v889_v3 }
 0xd1c   :  { %v1175_v58 = vpop.f32.mrb[20].mxu0 }
 0xd1d   :  { %v1176_v59 = vadd.f32 %v1976_v54, %v1175_v58  ;;  %v2190_v60 = vpop.f32.mrb[21].mxu0 }
 0xd1e   :  { %v1178_v61 = vpop.f32.mrb[22].mxu0 }
 0xd1f   :  { %v1179_v63 = vadd.f32 %v1976_v54, %v1178_v61  ;;  %v2191_v0 = vpop.f32.mrb[23].mxu0  ;;  %v1182_v2 = vadd.f32 %v1176_v59, %v2617_v56  ;;  %v899_v56 = vsel %vm592_vm13, %v892_v9, 0.0  ;;  %v1980_v59 = vld [vmem:[#allocation5 + $0xd0] ss:$0 sm:$0xff] }
 0xd20   :  { %v1981_v0 = vld [vmem:[#allocation5 + $0xd8] ss:$0 sm:$0xff] }
 0xd21   :  { %v1186_v4 = vsel %vm286_vm9, %v1182_v2, 0.0  ;;  %v1183_v46 = vadd.f32 %v1179_v63, %v2613_v55 }
 0xd22   :  { %1187 = vadd.xlane.f32.xlu1 %v1186_v4 }
 0xd23   :  { %v1189_v6 = vsel %vm286_vm9, %v1183_v46, 0.0 }
 0xd24   :  { %1190 = vadd.xlane.f32.xlu0 %v1189_v6  ;;  %v1986_v6 = vld [vmem:[#allocation5 + $0xb0] ss:$0 sm:$0xff] }
 0xd26   :  { %894 = vadd.xlane.f32.xlu1 %v893_v8 }
 0xd28   :  { %897 = vadd.xlane.f32.xlu0 %v896_v41 }
 0xd2a   :  { %900 = vadd.xlane.f32.xlu1 %v899_v56 }
 0xdaf   :  { %v1188_v55 = vpop.xlane.xlu1 %1187 }
 0xdb0   :  { %v1192_v12 = vmul.f32 0.03125, %v1188_v55 }
 0xdb1   :  { %v1191_v42 = vpop.xlane.xlu0 %1190 }
 0xdb2   :  { %v1194_v13 = vsub.f32 %v1182_v2, %v1192_v12  ;;  %v1193_v14 = vmul.f32 0.03125, %v1191_v42 }
 0xdb3   :  { %v895_v38 = vpop.xlane.xlu1 %894 }
 0xdb4   :  { %v1195_v15 = vsub.f32 %v1183_v46, %v1193_v14  ;;  %v902_v16 = vmul.f32 0.03125, %v895_v38  ;;  %v1196_v17 = vmul.f32 %v1194_v13, %v1194_v13 }
 0xdb5   :  { %v898_v18 = vpop.xlane.xlu0 %897 }
 0xdb6   :  { %v905_v19 = vadd.f32 1e-05, %v902_v16  ;;  %v903_v20 = vmul.f32 0.03125, %v898_v18  ;;  %v1198_v21 = vsel %vm286_vm9, %v1196_v17, 0.0  ;;  %v1197_v22 = vmul.f32 %v1195_v15, %v1195_v15 }
 0xdb7   :  { %1199 = vadd.xlane.f32.xlu0 %v1198_v21  ;;  %v901_v23 = vpop.xlane.xlu1 %900 }
 0xdb8   :  { %2344 = vrsqrt.f32 %v905_v19  ;;  %v906_v24 = vadd.f32 1e-05, %v903_v20  ;;  %v904_v25 = vmul.f32 0.03125, %v901_v23  ;;  %v1201_v26 = vsel %vm286_vm9, %v1197_v22, 0.0  ;;  %v256_v20 = vld [vmem:[#allocation5 + $0x38] sm:$0xff]  ;;  %v257_v22 = vld [vmem:[#allocation5 + $0x40] sm:$0xff] }
 0xdb9   :  { %1202 = vadd.xlane.f32.xlu1 %v1201_v26 }
 0xdba   :  { %2346 = vrsqrt.f32 %v906_v24  ;;  %v907_v27 = vadd.f32 1e-05, %v904_v25 }
 0xdbc   :  { %2348 = vrsqrt.f32 %v907_v27 }
 0xdc2   :  { %v2345_v28 = vpop.eup %2344 }
 0xdc3   :  { %v911_v30 = vmul.f32 %v2345_v28, %v887_v44 }
 0xdc4   :  { %v2347_v31 = vpop.eup %2346 }
 0xdc5   :  { %v912_v32 = vmul.f32 %v2347_v31, %v888_v62  ;;  %v918_v33 = vmul.f32 %v1968_v29, %v911_v30 }
 0xdc6   :  { %v2349_v34 = vpop.eup %2348 }
 0xdc7   :  { %v913_v36 = vmul.f32 %v2349_v34, %v889_v3  ;;  %v919_v37 = vmul.f32 %v1968_v29, %v912_v32  ;;  %v925_v39 = vadd.f32 %v1969_v35, %v918_v33 }
 0xdc9   :  { %v926_v43 = vadd.f32 %v1969_v35, %v919_v37  ;;  %v920_v45 = vmul.f32 %v1968_v29, %v913_v36 }
 0xdcb   :  { %v1296_v47 = vpack.c.bf16 %v926_v43, %v925_v39  ;;  %v927_v48 = vadd.f32 %v1969_v35, %v920_v45 }
 0xdcd   :  { %2204 = vmatprep.mubr.msk.bf16.mxu0 %vm286_vm9, %v1296_v47  ;;  %v1297_v49 = vpack.c.bf16 %v927_v48, %v927_v48 }
 0xdcf   :  { %2205 = vmatmul.mubr.msk.bf16.vlgmr.msra.gmra.mrb[24].mxu0 %vm286_vm9, %v1297_v49 }
 0xdd0   :  { %2220 = vmatprep.mubr.msk.bf16.mxu0 %vm2454_vm1, %v2453_v1 }
 0xe44   :  { %v1200_v52 = vpop.xlane.xlu0 %1199 }
 0xe45   :  { %v1204_v53 = vmul.f32 0.03125, %v1200_v52 }
 0xe46   :  { %v1203_v54 = vpop.xlane.xlu1 %1202 }
 0xe47   :  { %v1206_v57 = vadd.f32 1e-05, %v1204_v53  ;;  %v1205_v58 = vmul.f32 0.03125, %v1203_v54 }
 0xe49   :  { %2350 = vrsqrt.f32 %v1206_v57  ;;  %v1207_v44 = vadd.f32 1e-05, %v1205_v58  ;;  %v2302_v57 = vld [vmem:[#allocation2 + $0xc4] sm:$0xff]  }
 0xe4b   :  { %2352 = vrsqrt.f32 %v1207_v44  ;;  %v2303_v44 = vld [vmem:[#allocation2 + $0xcc] sm:$0xff]  }
 0xe53   :  { %v2351_v40 = vpop.eup %2350 }
 0xe54   :  { %v1210_v60 = vmul.f32 %v2351_v40, %v1194_v13  ;;  %v1982_v13 = vld [vmem:[#allocation5 + $0xa8] ss:$0 sm:$0xff] }
 0xe55   :  { %v2353_v61 = vpop.eup %2352 }
 0xe56   :  { %v1216_v62 = vmul.f32 %v1980_v59, %v1210_v60  ;;  %v1211_v63 = vmul.f32 %v2353_v61, %v1195_v15 }
 0xe58   :  { %v1217_v2 = vmul.f32 %v1980_v59, %v1211_v63  ;;  %v2679_v3 = vadd.f32 %v1981_v0, %v1216_v62  ;;  %v1993_v63 = vld [vmem:[#allocation5 + $0xb8] ss:$0 sm:$0xff] }
 0xe5a   :  { %v2681_v4 = vadd.f32 %v1981_v0, %v1217_v2 }
 0xe5c   :  { %v1229_v46 = vpack.c.bf16 %v2681_v4, %v2679_v3 }
 0xe5e   :  { %2197 = vmatmul.mubr.msk.bf16.vlgmr.msra.gmra.mrb[24].mxu1 %vm286_vm9, %v1229_v46 }
 0xe5f   :  { %2212 = vmatprep.mubr.msk.bf16.mxu1 %vm2454_vm1, %v2453_v1 }
 0xea2   :  { %v2206_v5 = vpop.f32.mrb[24].mxu0 }
 0xea3   :  { %v1354_v7 = vpop.f32.mrb[25].mxu0  ;;  %v1363_v11 = vadd.f32 %v2206_v5, %v1986_v6 }
 0xea4   :  { %v2207_v8 = vpop.f32.mrb[26].mxu0  ;;  %v1355_v41 = vadd.f32 %v1986_v6, %v1354_v7 }
 0xea5   :  { %v1357_v9 = vpop.f32.mrb[27].mxu0  ;;  %v1369_v12 = vpack.c.bf16 %v1363_v11, %v1363_v11 }
 0xea6   :  { %v1358_v56 = vadd.f32 %v1986_v6, %v1357_v9 }
 0xea7   :  { %v1382_v42 = vsel %vm286_vm9, %v1369_v12, 0 }
 0xea8   :  { %v1368_v10 = vpack.c.bf16 %v1358_v56, %v1355_v41 }
 0xeaa   :  { %v1379_v55 = vsel %vm286_vm9, %v1368_v10, 0 }
 0xeab   :  { %2209 = vmatpush3.bf16.xpose.msra.mxu1 %v1379_v55 }
 0xeac   :  { %2210 = vmatprep.subr.bf16.mxu1 %v2453_v1 }
 0xeb3   :  { %2211 = vmatpush3.bf16.xpose.msra.mxu1 %v1382_v42 }
 0xeb4   :  { %2232 = vmatprep.subr.bf16.mxu1 %v2453_v1 }
 0xf31   :  { %v1283_v14 = vpop.f32.mrb[24].mxu1 }
 0xf32   :  { %v2198_v38 = vpop.f32.mrb[25].mxu1  ;;  %v1284_v16 = vadd.f32 %v1982_v13, %v1283_v14 }
 0xf33   :  { %v1286_v15 = vpop.f32.mrb[26].mxu1 }
 0xf34   :  { %v1287_v17 = vadd.f32 %v1982_v13, %v1286_v15  ;;  %v2199_v18 = vpop.f32.mrb[27].mxu1 }
 0xf35   :  { %v2307_v18 = vld [vmem:[#allocation2 + $0xec] sm:$0xff]  }
 0xf36   :  { %v1290_v19 = vpack.c.bf16 %v1287_v17, %v1284_v16  ;;  %v2304_v16 = vld [vmem:[#allocation2 + $0xd4] sm:$0xff]   ;;  %v2306_v17 = vld [vmem:[#allocation2 + $0xe4] sm:$0xff]  }
 0xf38   :  { %2213 = vmatmul.mubr.msk.bf16.vlgmr.msra.gmra.mrb[28].mxu1 %vm286_vm9, %v1290_v19 }
 0xf39   :  { %2236 = vmatprep.mubr.msk.bf16.mxu1 %vm2454_vm1, %v2453_v1  ;;  %2233 = vmatpush3.bf16.msra.mxu1 %v2304_v16 }
 0xf3a   :  { %2234 = vmatprep.subr.bf16.mxu1 %v2453_v1 }
0x100b   :  { %v1418_v21 = vpop.f32.mrb[28].mxu1 }
0x100c   :  { %v1419_v23 = vadd.f32 %v1418_v21, %v256_v20  ;;  %v2214_v24 = vpop.f32.mrb[29].mxu1 }
0x100d   :  { %v1421_v25 = vpop.f32.mrb[30].mxu1 }
0x100e   :  { %v1422_v26 = vadd.f32 %v1421_v25, %v257_v22  ;;  %v2215_v27 = vpop.f32.mrb[31].mxu1  ;;  %v1425_v28 = vsel %vm409_vm10, %v1419_v23, -inf }
0x100f   :  { %1426 = vmax.xlane.f32.xlu0 %v1425_v28 }
0x1010   :  { %v1428_v29 = vsel %vm409_vm10, %v1422_v26, -inf }
0x1011   :  { %1429 = vmax.xlane.f32.xlu1 %v1428_v29 }
0x109c   :  { %v1427_v30 = vpop.xlane.xlu0 %1426 }
0x109d   :  { %v1431_v31 = vsub.f32 %v1419_v23, %v1427_v30 }
0x109e   :  { %v1430_v32 = vpop.xlane.xlu1 %1429 }
0x109f   :  { %v1433_v33 = vmul.f32 1.442695, %v1431_v31  ;;  %v1432_v34 = vsub.f32 %v1422_v26, %v1430_v32  ;;  %v1997_v26 = vld [vmem:[#allocation5 + $0xe0] ss:$0 sm:$0xff]  ;;  %v1998_v31 = vld [vmem:[#allocation5 + $0xe8] ss:$0 sm:$0xff] }
0x10a1   :  { %2354 = vpow2.f32 %v1433_v33  ;;  %v1435_v35 = vmul.f32 1.442695, %v1432_v34 }
0x10a3   :  { %2356 = vpow2.f32 %v1435_v35 }
0x10ab   :  { %v2355_v36 = vpop.eup %2354 }
0x10ac   :  { %v1437_v37 = vsel %vm409_vm10, %v2355_v36, 0.0 }
0x10ad   :  { %v2357_v39 = vpop.eup %2356  ;;  %1438 = vadd.xlane.f32.xlu0 %v1437_v37  ;;  %v2309_v37 = vld [vmem:[#allocation2 + $0xfc] sm:$0xff]  }
0x10ae   :  { %v1440_v43 = vsel %vm409_vm10, %v2357_v39, 0.0 }
0x10af   :  { %1441 = vadd.xlane.f32.xlu1 %v1440_v43 }
0x10c0   :  { %1452 = vrot.lane.b32.xlu1 %v1369_v12, %s2455_s0 }
0x10c3   :  { %1450 = vrot.lane.b32.xlu0 %v1368_v10, %s2455_s0 }
0x113a   :  { %v1439_v45 = vpop.xlane.xlu0 %1438 }
0x113b   :  { %2358 = vrcp.f32 %v1439_v45 }
0x113c   :  { %v1442_v47 = vpop.xlane.xlu1 %1441 }
0x113d   :  { %2360 = vrcp.f32 %v1442_v47 }
0x113e   :  { %v1451_v48 = vpop.permute.xlu0 %1450 }
0x113f   :  { %2217 = vmatpush3.bf16.msra.mxu0 %v1451_v48 }
0x1140   :  { %v1453_v49 = vpop.permute.xlu1 %1452  ;;  %2218 = vmatprep.subr.bf16.mxu0 %v2453_v1 }
0x1141   :  { %v1459_v50 = vsel %vm457_vm12, %v1453_v49, 0 }
0x1143   :  { %2219 = vmatpush3.bf16.msra.mxu0 %v1459_v50 }
0x1144   :  { %2224 = vmatprep.subr.bf16.mxu0 %v2453_v1 }
0x1145   :  { %v2359_v51 = vpop.eup %2358 }
0x1146   :  { %v1444_v53 = vmul.f32 %v2359_v51, %v2355_v36  ;;  %v2308_v36 = vld [vmem:[#allocation2 + $0xf4] sm:$0xff]  }
0x1147   :  { %v2361_v52 = vpop.eup %2360 }
0x1148   :  { %v1446_v54 = vmul.f32 %v2361_v52, %v2357_v39  ;;  %v1999_v39 = vld [vmem:[#allocation5 + $0xc0] ss:$0 sm:$0xff] }
0x114a   :  { %v1447_v58 = vpack.c.bf16 %v1446_v54, %v1444_v53  ;;  %v2003_v54 = vld [vmem:[#allocation5 + $0xc8] ss:$0 sm:$0xff] }
0x114c   :  { %2221 = vmatmul.mubr.msk.bf16.vlgmr.msra.gmra.mrb[28].mxu0 %vm409_vm10, %v1447_v58 }
0x114d   :  { %2225 = vmatpush3.bf16.msra.mxu0 %v2302_v57  ;;  %2228 = vmatprep.mubr.msk.bf16.mxu0 %vm2454_vm1, %v2453_v1 }
0x114e   :  { %2226 = vmatprep.subr.bf16.mxu0 %v2453_v1 }
0x1151   :  { %2227 = vmatpush3.bf16.msra.mxu0 %v2303_v44 }
0x1152   :  { %2240 = vmatprep.subr.bf16.mxu0 %v2453_v1 }
0x121f   :  { %v1495_v40 = vpop.f32.mrb[28].mxu0 }
0x1220   :  { %v2222_v59 = vpop.f32.mrb[29].mxu0 }
0x1221   :  { %v1498_v60 = vpop.f32.mrb[30].mxu0 }
0x1222   :  { %v1502_v61 = vpack.c.bf16 %v1498_v60, %v1495_v40  ;;  %v2223_v62 = vpop.f32.mrb[31].mxu0 }
0x1224   :  { %2229 = vmatmul.mubr.msk.bf16.vlgmr.msra.gmra.mrb[32].mxu0 %vm286_vm9, %v1502_v61 }
0x1225   :  { %2248 = vmatprep.mubr.msk.bf16.mxu0 %vm2454_vm1, %v2453_v1  ;;  %2241 = vmatpush3.bf16.msra.mxu0 %v2306_v17 }
0x1226   :  { %2242 = vmatprep.subr.bf16.mxu0 %v2453_v1 }
0x1229   :  { %2243 = vmatpush3.bf16.msra.mxu0 %v2307_v18 }
0x122a   :  { %2244 = vmatprep.subr.bf16.mxu0 %v2453_v1 }
0x122d   :  { %2245 = vmatpush3.bf16.msra.mxu0 %v2308_v36 }
0x122e   :  { %2246 = vmatprep.subr.bf16.mxu0 %v2453_v1 }
0x1231   :  { %2247 = vmatpush3.bf16.msra.mxu0 %v2309_v37 }
0x12f7   :  { %v1556_v0 = vpop.f32.mrb[32].mxu0 }
0x12f8   :  { %v1557_v2 = vadd.f32 %v1993_v63, %v1556_v0  ;;  %v2230_v46 = vpop.f32.mrb[33].mxu0 }
0x12f9   :  { %v1559_v5 = vpop.f32.mrb[34].mxu0 }
0x12fa   :  { %v1560_v6 = vadd.f32 %v1993_v63, %v1559_v5  ;;  %v2231_v7 = vpop.f32.mrb[35].mxu0  ;;  %v1563_v8 = vadd.f32 %v1557_v2, %v2679_v3 }
0x12fc   :  { %v1567_v9 = vsel %vm286_vm9, %v1563_v8, 0.0  ;;  %v1564_v41 = vadd.f32 %v1560_v6, %v2681_v4  ;;  %v2305_v4 = vld [vmem:[#allocation2 + $0xdc] sm:$0xff]  }
0x12fd   :  { %1568 = vadd.xlane.f32.xlu1 %v1567_v9  ;;  %2235 = vmatpush3.bf16.msra.mxu1 %v2305_v4  ;;  %v2010_v4 = vld [vmem:[#allocation5 + $0xf8] ss:$0 sm:$0xff] }
0x12fe   :  { %v1570_v56 = vsel %vm286_vm9, %v1564_v41, 0.0  ;;  %2252 = vmatprep.subr.bf16.mxu1 %v2453_v1 }
0x12ff   :  { %1571 = vadd.xlane.f32.xlu0 %v1570_v56 }
0x138a   :  { %v1569_v10 = vpop.xlane.xlu1 %1568 }
0x138b   :  { %v1573_v11 = vmul.f32 0.03125, %v1569_v10 }
0x138c   :  { %v1572_v55 = vpop.xlane.xlu0 %1571 }
0x138d   :  { %v1575_v12 = vsub.f32 %v1563_v8, %v1573_v11  ;;  %v1574_v42 = vmul.f32 0.03125, %v1572_v55 }
0x138f   :  { %v1576_v13 = vsub.f32 %v1564_v41, %v1574_v42  ;;  %v1577_v14 = vmul.f32 %v1575_v12, %v1575_v12 }
0x1391   :  { %v1579_v38 = vsel %vm286_vm9, %v1577_v14, 0.0  ;;  %v1578_v15 = vmul.f32 %v1576_v13, %v1576_v13 }
0x1392   :  { %1580 = vadd.xlane.f32.xlu0 %v1579_v38 }
0x1393   :  { %v1582_v3 = vsel %vm286_vm9, %v1578_v15, 0.0  ;;  %v2009_v15 = vld [vmem:[#allocation5 + $0xf0] ss:$0 sm:$0xff] }
0x1394   :  { %1583 = vadd.xlane.f32.xlu1 %v1582_v3 }
0x141f   :  { %v1581_v19 = vpop.xlane.xlu0 %1580 }
0x1420   :  { %v1585_v20 = vmul.f32 0.03125, %v1581_v19 }
0x1421   :  { %v1584_v21 = vpop.xlane.xlu1 %1583 }
0x1422   :  { %v1587_v22 = vadd.f32 1e-05, %v1585_v20  ;;  %v1586_v23 = vmul.f32 0.03125, %v1584_v21 }
0x1424   :  { %2362 = vrsqrt.f32 %v1587_v22  ;;  %v1588_v24 = vadd.f32 1e-05, %v1586_v23 }
0x1426   :  { %2364 = vrsqrt.f32 %v1588_v24 }
0x142e   :  { %v2363_v25 = vpop.eup %2362 }
0x142f   :  { %v1591_v27 = vmul.f32 %v2363_v25, %v1575_v12 }
0x1430   :  { %v2365_v28 = vpop.eup %2364 }
0x1431   :  { %v1597_v29 = vmul.f32 %v1997_v26, %v1591_v27  ;;  %v1592_v30 = vmul.f32 %v2365_v28, %v1576_v13 }
0x1433   :  { %v1598_v32 = vmul.f32 %v1997_v26, %v1592_v30  ;;  %v1603_v33 = vadd.f32 %v1998_v31, %v1597_v29 }
0x1435   :  { %v1604_v34 = vadd.f32 %v1998_v31, %v1598_v32 }
0x1437   :  { %v1619_v35 = vpack.c.bf16 %v1604_v34, %v1603_v33 }
0x1439   :  { %2237 = vmatmul.mubr.msk.bf16.vlgmr.msra.gmra.mrb[32].mxu1 %vm286_vm9, %v1619_v35  ;;  %v2311_v35 = vld [vmem:[#allocation2 + $0x10c] sm:$0xff]  }
0x143a   :  { %2256 = vmatprep.mubr.msk.bf16.mxu1 %vm2454_vm1, %v2453_v1 }
0x150c   :  { %v1673_v43 = vpop.f32.mrb[32].mxu1 }
0x150d   :  { %v1674_v45 = vadd.f32 %v1999_v39, %v1673_v43  ;;  %v2238_v47 = vpop.f32.mrb[33].mxu1 }
0x150e   :  { %v1676_v48 = vpop.f32.mrb[34].mxu1 }
0x150f   :  { %v1677_v49 = vadd.f32 %v1999_v39, %v1676_v48  ;;  %v2239_v50 = vpop.f32.mrb[35].mxu1  ;;  %v1680_v51 = vmax.f32 %v1674_v45, 0.0 }
0x1511   :  { %v1681_v52 = vmax.f32 %v1677_v49, 0.0  ;;  %v2011_v49 = vld [vmem:[#allocation5 + $0x100] ss:$0 sm:$0xff] }
0x1513   :  { %v1682_v53 = vpack.c.bf16 %v1681_v52, %v1680_v51 }
0x1515   :  { %2249 = vmatmul.mubr.msk.bf16.vlgmr.msra.gmra.mrb[36].mxu0 %vm760_vm14, %v1682_v53 }
0x15e8   :  { %v1748_v57 = vpop.f32.mrb[36].mxu0 }
0x15e9   :  { %v1749_v58 = vadd.f32 %v2003_v54, %v1748_v57  ;;  %v2250_v44 = vpop.f32.mrb[37].mxu0 }
0x15ea   :  { %v1751_v40 = vpop.f32.mrb[38].mxu0 }
0x15eb   :  { %v1752_v59 = vadd.f32 %v2003_v54, %v1751_v40  ;;  %v2251_v60 = vpop.f32.mrb[39].mxu0  ;;  %v1755_v61 = vadd.f32 %v1749_v58, %v1603_v33  ;;  %v2012_v54 = vld [vmem:[#allocation5 + $0x108] ss:$0 sm:$0xff]  ;;  %v2013_v40 = vld [vmem:[#allocation5 + $0x110] ss:$0 sm:$0xff] }
0x15ed   :  { %v1759_v62 = vsel %vm286_vm9, %v1755_v61, 0.0  ;;  %v1756_v63 = vadd.f32 %v1752_v59, %v1604_v34  ;;  %v2310_v34 = vld [vmem:[#allocation2 + $0x104] sm:$0xff]  }
0x15ee   :  { %1760 = vadd.xlane.f32.xlu0 %v1759_v62  ;;  %2253 = vmatpush3.bf16.msra.mxu1 %v2310_v34 }
0x15ef   :  { %v1762_v0 = vsel %vm286_vm9, %v1756_v63, 0.0  ;;  %2254 = vmatprep.subr.bf16.mxu1 %v2453_v1 }
0x15f0   :  { %1763 = vadd.xlane.f32.xlu1 %v1762_v0 }
0x15f2   :  { %2255 = vmatpush3.bf16.msra.mxu1 %v2311_v35 }
0x167b   :  { %v1761_v2 = vpop.xlane.xlu0 %1760 }
0x167c   :  { %v1765_v46 = vmul.f32 0.03125, %v1761_v2 }
0x167d   :  { %v1764_v5 = vpop.xlane.xlu1 %1763 }
0x167e   :  { %v1767_v6 = vsub.f32 %v1755_v61, %v1765_v46  ;;  %v1766_v7 = vmul.f32 0.03125, %v1764_v5 }
0x1680   :  { %v1768_v8 = vsub.f32 %v1756_v63, %v1766_v7  ;;  %v1769_v9 = vmul.f32 %v1767_v6, %v1767_v6 }
0x1682   :  { %v1771_v41 = vsel %vm286_vm9, %v1769_v9, 0.0  ;;  %v1770_v56 = vmul.f32 %v1768_v8, %v1768_v8 }
0x1683   :  { %1772 = vadd.xlane.f32.xlu0 %v1771_v41 }
0x1684   :  { %v1774_v10 = vsel %vm286_vm9, %v1770_v56, 0.0 }
0x1685   :  { %1775 = vadd.xlane.f32.xlu1 %v1774_v10 }
0x1710   :  { %v1773_v11 = vpop.xlane.xlu0 %1772 }
0x1711   :  { %v1777_v55 = vmul.f32 0.03125, %v1773_v11 }
0x1712   :  { %v1776_v12 = vpop.xlane.xlu1 %1775 }
0x1713   :  { %v1779_v42 = vadd.f32 1e-05, %v1777_v55  ;;  %v1778_v13 = vmul.f32 0.03125, %v1776_v12 }
0x1715   :  { %2366 = vrsqrt.f32 %v1779_v42  ;;  %v1780_v14 = vadd.f32 1e-05, %v1778_v13 }
0x1717   :  { %2368 = vrsqrt.f32 %v1780_v14 }
0x171f   :  { %v2367_v38 = vpop.eup %2366 }
0x1720   :  { %v1783_v3 = vmul.f32 %v2367_v38, %v1767_v6 }
0x1721   :  { %v2369_v16 = vpop.eup %2368 }
0x1722   :  { %v1789_v17 = vmul.f32 %v2009_v15, %v1783_v3  ;;  %v1784_v18 = vmul.f32 %v2369_v16, %v1768_v8 }
0x1724   :  { %v1795_v19 = vadd.f32 %v2010_v4, %v1789_v17  ;;  %v1790_v20 = vmul.f32 %v2009_v15, %v1784_v18 }
0x1726   :  { %v1799_v21 = vsel %vm286_vm9, %v1795_v19, 0.0  ;;  %v1796_v22 = vadd.f32 %v2010_v4, %v1790_v20 }
0x1727   :  { %1800 = vadd.xlane.f32.xlu0 %v1799_v21 }
0x1728   :  { %v1802_v23 = vsel %vm286_vm9, %v1796_v22, 0.0 }
0x1729   :  { %1803 = vadd.xlane.f32.xlu1 %v1802_v23 }
0x17b4   :  { %v1801_v24 = vpop.xlane.xlu0 %1800 }
0x17b5   :  { %v1805_v25 = vmul.f32 0.03125, %v1801_v24 }
0x17b6   :  { %v1804_v26 = vpop.xlane.xlu1 %1803 }
0x17b7   :  { %v1807_v27 = vsub.f32 %v1795_v19, %v1805_v25  ;;  %v1806_v28 = vmul.f32 0.03125, %v1804_v26 }
0x17b9   :  { %v1808_v29 = vsub.f32 %v1796_v22, %v1806_v28  ;;  %v1809_v30 = vmul.f32 %v1807_v27, %v1807_v27 }
0x17bb   :  { %v1811_v31 = vsel %vm286_vm9, %v1809_v30, 0.0  ;;  %v1810_v32 = vmul.f32 %v1808_v29, %v1808_v29 }
0x17bc   :  { %1812 = vadd.xlane.f32.xlu0 %v1811_v31 }
0x17bd   :  { %v1814_v33 = vsel %vm286_vm9, %v1810_v32, 0.0 }
0x17be   :  { %1815 = vadd.xlane.f32.xlu1 %v1814_v33 }
0x1849   :  { %v1813_v36 = vpop.xlane.xlu0 %1812 }
0x184a   :  { %v1817_v37 = vmul.f32 0.03125, %v1813_v36 }
0x184b   :  { %v1816_v39 = vpop.xlane.xlu1 %1815 }
0x184c   :  { %v1819_v43 = vadd.f32 1e-05, %v1817_v37  ;;  %v1818_v45 = vmul.f32 0.03125, %v1816_v39 }
0x184e   :  { %2370 = vrsqrt.f32 %v1819_v43  ;;  %v1820_v47 = vadd.f32 1e-05, %v1818_v45 }
0x1850   :  { %2372 = vrsqrt.f32 %v1820_v47 }
0x1858   :  { %v2371_v48 = vpop.eup %2370 }
0x1859   :  { %v1823_v50 = vmul.f32 %v2371_v48, %v1807_v27 }
0x185a   :  { %v2373_v51 = vpop.eup %2372 }
0x185b   :  { %v1829_v52 = vmul.f32 %v2011_v49, %v1823_v50  ;;  %v1824_v53 = vmul.f32 %v2373_v51, %v1808_v29 }
0x185d   :  { %v1830_v57 = vmul.f32 %v2011_v49, %v1824_v53  ;;  %v1835_v58 = vadd.f32 %v2012_v54, %v1829_v52 }
0x185f   :  { %v1836_v1 = vadd.f32 %v2012_v54, %v1830_v57 }
0x1861   :  { %v1842_v44 = vpack.c.bf16 %v1836_v1, %v1835_v58 }
0x1863   :  { %2257 = vmatmul.mubr.msk.bf16.vlgmr.msra.gmra.mrb[36].mxu1 %vm286_vm9, %v1842_v44 }
0x1936   :  { %v1896_v59 = vpop.f32.mrb[36].mxu1 }
0x1937   :  { %v1897_v60 = vadd.f32 %v2013_v40, %v1896_v59  ;;  %v2258_v61 = vpop.f32.mrb[37].mxu1 }
0x1938   :  { %v1899_v62 = vpop.f32.mrb[38].mxu1 }
0x1939   :  { %1903 = vst [vmem:[#allocation7] sm:$0xff] %v1897_v60  ;;  %v1900_v63 = vadd.f32 %v2013_v40, %v1899_v62  ;;  %v2259_v0 = vpop.f32.mrb[39].mxu1 }
0x193b   :  { %1904 = vst [vmem:[#allocation7 + $0x8] sm:$0xff] %v1900_v63 }
0x193c   :  { %2429 = shalt.err (!%p2426_p6)
}
0x193d   :  { %s2430_s13 = scalar_lea.hbm %s2757_s5, 256 }
0x193e   :  { %p2431_p7 = scmp.ne.s32.totalorder %s2757_s5, %s2430_s13  ;;  %p2434_p8 = scmp.lt.u32.totalorder %s2430_s13, %s2757_s5 }
0x1940   :  { %p2436_p9 = pnand %p2434_p8, %p2431_p7 }
0x1942   :  { %2439 = shalt.err (!%p2436_p9)
}
0x1943   :  { %1916 = dma.vmem_to_hbm [thread:$0]  %s1911_s28, 256, %s2757_s5, [#allocation4], %s2450_s3, %s2450_s3, %s2451_s17  }
0x1944   :  { %2444 = dma.done.wait [#allocation4], 256  }
0x1945   :  { %2445 = vsyncadd [#allocation4], 4294967040 }
0x1946   :  { %1920 = vsyncpa [#allocation3], 1 }
0x1947   :  { %1921 = vsyncpa [#allocation6], 1 }
0x1948   :  { %1922 = vsyncpa [#allocation4], 1 }

</bundles_post_ra>
